<compile_context>
chip_gen: v7x
topology: tpu7x:2x2x1
jax: 0.10.0
libtpu: 0.0.40
codegen_flags: <defaults>
</compile_context>

<pallas_src>
import functools

import jax
import jax.numpy as jnp
from jax.experimental import pallas as pl
from jax.experimental.pallas import tpu as pltpu

_VMEM = pl.BlockSpec(memory_space=pltpu.MemorySpace.VMEM)


# ----------------------------------------------------------------------------
# Kernel 1: conv block = single im2col GEMM + (BN-folded) bias + ReLU + MaxPool2d(2).
#           Whole batch in one block; gridless.
# ----------------------------------------------------------------------------
def conv_gemm_relu_pool_kernel(p_ref, w_ref, b_ref, o_ref, *, B, H, W, Cout):
    # p_ref: (B*H*W, 9*Cin)  im2col patches, rows ordered (b, h, w)
    # w_ref: (9*Cin, Cout)   conv weights with BN scale folded in
    # b_ref: (1, Cout)       conv bias + BN shift folded together
    # o_ref: (B, H//2, W//2, Cout)
    Ho, Wo = H // 2, W // 2
    acc = jnp.dot(p_ref[...], w_ref[...], preferred_element_type=jnp.float32)
    acc = jnp.maximum(acc + b_ref[...], 0.0)                 # conv + BN + ReLU

    # MaxPool2d(2): pool over h (row pairs W apart), then over w (adjacent rows).
    a = acc.reshape(B * Ho, 2, W, Cout)                      # minor dim preserved
    hp = jnp.maximum(a[:, 0], a[:, 1])                       # (B*Ho, W, Cout)
    b2 = hp.reshape(B * Ho * Wo, 2, Cout)                    # minor dim preserved
    pooled = jnp.maximum(b2[:, 0, :], b2[:, 1, :])           # (B*Ho*Wo, Cout)
    o_ref[...] = pooled.reshape(B, Ho, Wo, Cout).astype(o_ref.dtype)


def fold_conv_bn(w, b, gamma, beta, mean, var, eps=1e-5):
    """Fold inference BatchNorm into the conv weight/bias.  w: (3,3,Cin,Cout) HWIO."""
    scale = gamma / jnp.sqrt(var + eps)                      # (Cout,)
    w_f = (w * scale).reshape(9 * w.shape[2], w.shape[3])    # (9*Cin, Cout)
    b_f = (scale * (b - mean) + beta).reshape(1, -1)         # (1, Cout)
    return w_f, b_f


def conv_block(x_nhwc, w_f, b_f):
    """Fused Conv2d(3x3, pad=1)+BN+ReLU+MaxPool2d(2): (B,H,W,Cin) -> (B,H/2,W/2,Cout)."""
    B, H, W, Cin = x_nhwc.shape
    Cout = w_f.shape[-1]
    assert H % 2 == 0 and W % 2 == 0, "MaxPool2d(2) path assumes even spatial dims"

    # im2col (3x3, pad=1) as XLA glue feeding a single-GEMM kernel (K = 9*Cin).
    # TODO(synk): for large activations build the patches inside the kernel (VMEM scratch
    #             + masked taps) to avoid the 9x HBM expansion of the activation.
    xp = jnp.pad(x_nhwc, ((0, 0), (1, 1), (1, 1), (0, 0)))
    taps = [xp[:, dh:dh + H, dw:dw + W, :] for dh in range(3) for dw in range(3)]
    patches = jnp.concatenate(taps, axis=-1).reshape(B * H * W, 9 * Cin)

    kern = functools.partial(conv_gemm_relu_pool_kernel, B=B, H=H, W=W, Cout=Cout)
    # TODO(synk): on v7x (2 TensorCores) a size-2 "parallel" batch grid axis would shard
    #             the conv across cores; on v5e/v6e (1 TC) the gridless form is faster.
    return pl.pallas_call(
        kern,
        out_shape=jax.ShapeDtypeStruct((B, H // 2, W // 2, Cout), jnp.float32),
        in_specs=[_VMEM, _VMEM, _VMEM],
        out_specs=_VMEM,
    )(patches, w_f, b_f)


# ----------------------------------------------------------------------------
# Kernel 2: fused classifier  Linear(512)+ReLU -> Linear(256)+ReLU -> Linear(2).
#           All FC weights resident in VMEM, one launch.
# ----------------------------------------------------------------------------
def classifier_kernel(x_ref, w1_ref, b1_ref, w2_ref, b2_ref, w3_ref, b3_ref, o_ref):
    h = jnp.dot(x_ref[...], w1_ref[...], preferred_element_type=jnp.float32) + b1_ref[...]
    h = jnp.maximum(h, 0.0)
    # TODO(synk): Dropout(0.5) is identity in eval/inference mode; no masking implemented.
    h = jnp.dot(h, w2_ref[...], preferred_element_type=jnp.float32) + b2_ref[...]
    h = jnp.maximum(h, 0.0)
    y = jnp.dot(h, w3_ref[...], preferred_element_type=jnp.float32) + b3_ref[...]
    o_ref[...] = y.astype(o_ref.dtype)


def classifier(x, w1, b1, w2, b2, w3, b3):
    B = x.shape[0]
    O = w3.shape[-1]
    # TODO(synk): for much larger feature dims add a K-tiled grid + VMEM accumulator
    #             (and vmem_limit_bytes) so the whole-problem block fits v7x's 64 MiB VMEM.
    return pl.pallas_call(
        classifier_kernel,
        out_shape=jax.ShapeDtypeStruct((B, O), jnp.float32),
        in_specs=[_VMEM] * 7,
        out_specs=_VMEM,
    )(x, w1, b1, w2, b2, w3, b3)


# ----------------------------------------------------------------------------
# Model: parameter construction + forward (mirrors CustomCNN.forward, eval mode)
# ----------------------------------------------------------------------------
def init_params(key, layers, img_height):
    params = {"convs": [], "fcs": []}
    in_ch = 3
    for out_ch in layers:
        key, k1, k2, k3, k4, k5 = jax.random.split(key, 6)
        params["convs"].append({
            "w": 0.05 * jax.random.normal(k1, (3, 3, in_ch, out_ch), jnp.float32),
            "b": 0.05 * jax.random.normal(k2, (out_ch,), jnp.float32),
            "gamma": 1.0 + 0.05 * jax.random.normal(k3, (out_ch,), jnp.float32),
            "beta": 0.05 * jax.random.normal(k4, (out_ch,), jnp.float32),
            "mean": 0.05 * jax.random.normal(k5, (out_ch,), jnp.float32),
            "var": jnp.ones((out_ch,), jnp.float32),
        })
        in_ch = out_ch

    feat = in_ch * (img_height // 2 ** len(layers)) ** 2
    dims = [(feat, 512), (512, 256), (256, 2)]
    for fin, fout in dims:
        key, k1, k2 = jax.random.split(key, 3)
        params["fcs"].append({
            # (in, out); fc0 rows are in PyTorch NCHW-flatten order.
            "w": 0.05 * jax.random.normal(k1, (fin, fout), jnp.float32),
            "b": 0.05 * jax.random.normal(k2, (1, fout), jnp.float32),
        })
    return params


def custom_cnn_forward(params, x_nchw):
    x = jnp.transpose(x_nchw, (0, 2, 3, 1))                  # NCHW -> NHWC, once
    for cp in params["convs"]:
        w_f, b_f = fold_conv_bn(cp["w"], cp["b"], cp["gamma"], cp["beta"],
                                cp["mean"], cp["var"])
        x = conv_block(x, w_f, b_f)

    B, Ho, Wo, C = x.shape
    # nn.Flatten works on NCHW; instead of transposing the activation back we flatten in
    # NHWC order and permute the rows of fc1's weight once (identical semantics).
    perm = jnp.transpose(jnp.arange(C * Ho * Wo).reshape(C, Ho, Wo), (1, 2, 0)).reshape(-1)
    w1 = jnp.take(params["fcs"][0]["w"], perm, axis=0)
    x = x.reshape(B, C * Ho * Wo)                            # lane-dense (B, 128) input

    fcs = params["fcs"]
    return classifier(x, w1, fcs[0]["b"], fcs[1]["w"], fcs[1]["b"],
                      fcs[2]["w"], fcs[2]["b"])


if __name__ == "__main__":
    key = jax.random.PRNGKey(0)
    layers = [4, 8]          # two conv blocks
    img_height = 16
    batch = 2

    kp, kx = jax.random.split(key)
    params = init_params(kp, layers, img_height)
    x = jax.random.normal(kx, (batch, 3, img_height, img_height), jnp.float32)

    fwd = jax.jit(custom_cnn_forward)
    out = jax.block_until_ready(fwd(params, x))
    assert out.shape == (batch, 2), out.shape
    print("KERNEL_OK")
</pallas_src>

<mosaic_0001>
module attributes {stable_mosaic.version = 11 : i64} {
  func.func @conv_gemm_relu_pool_kernel(%arg0: memref<512x27xf32, #tpu.memory_space<vmem>>, %arg1: memref<27x4xf32, #tpu.memory_space<vmem>>, %arg2: memref<1x4xf32, #tpu.memory_space<vmem>>, %arg3: memref<2x8x8x4xf32, #tpu.memory_space<vmem>>) attributes {dimension_semantics = [], scalar_prefetch = 0 : i64, scratch_operands = 0 : i64, tpu.core_type = #tpu.core_type<tc>} {
    %c0 = arith.constant 0 : index
    %c0_0 = arith.constant 0 : index
    %0 = vector.load %arg0[%c0, %c0_0] : memref<512x27xf32, #tpu.memory_space<vmem>>, vector<512x27xf32>
    %c0_1 = arith.constant 0 : index
    %c0_2 = arith.constant 0 : index
    %1 = vector.load %arg1[%c0_1, %c0_2] : memref<27x4xf32, #tpu.memory_space<vmem>>, vector<27x4xf32>
    %cst = arith.constant dense<0.000000e+00> : vector<512x4xf32>
    %2 = tpu.matmul %0, %1, %cst {dimension_numbers = #tpu.dot_dimension_numbers<[1], [0], [0], [1], [0, 0, 1, 1], [], []>} : vector<512x27xf32>, vector<27x4xf32>, vector<512x4xf32> -> vector<512x4xf32>
    %c0_3 = arith.constant 0 : index
    %c0_4 = arith.constant 0 : index
    %3 = vector.load %arg2[%c0_3, %c0_4] : memref<1x4xf32, #tpu.memory_space<vmem>>, vector<1x4xf32>
    %4 = vector.broadcast %3 : vector<1x4xf32> to vector<512x4xf32>
    %5 = arith.addf %2, %4 : vector<512x4xf32>
    %cst_5 = arith.constant 0.000000e+00 : f32
    %6 = vector.broadcast %cst_5 : f32 to vector<512x4xf32>
    %7 = arith.maximumf %5, %6 : vector<512x4xf32>
    %8 = vector.shape_cast %7 : vector<512x4xf32> to vector<16x2x16x4xf32>
    %9 = vector.extract_strided_slice %8 {offsets = [0, 0, 0, 0], sizes = [16, 1, 16, 4], strides = [1, 1, 1, 1]} : vector<16x2x16x4xf32> to vector<16x1x16x4xf32>
    %10 = vector.shape_cast %9 : vector<16x1x16x4xf32> to vector<16x16x4xf32>
    %11 = vector.extract_strided_slice %8 {offsets = [0, 1, 0, 0], sizes = [16, 1, 16, 4], strides = [1, 1, 1, 1]} : vector<16x2x16x4xf32> to vector<16x1x16x4xf32>
    %12 = vector.shape_cast %11 : vector<16x1x16x4xf32> to vector<16x16x4xf32>
    %13 = arith.maximumf %10, %12 : vector<16x16x4xf32>
    %14 = vector.shape_cast %13 : vector<16x16x4xf32> to vector<128x2x4xf32>
    %15 = vector.extract_strided_slice %14 {offsets = [0, 0, 0], sizes = [128, 1, 4], strides = [1, 1, 1]} : vector<128x2x4xf32> to vector<128x1x4xf32>
    %16 = vector.shape_cast %15 : vector<128x1x4xf32> to vector<128x4xf32>
    %17 = vector.extract_strided_slice %14 {offsets = [0, 1, 0], sizes = [128, 1, 4], strides = [1, 1, 1]} : vector<128x2x4xf32> to vector<128x1x4xf32>
    %18 = vector.shape_cast %17 : vector<128x1x4xf32> to vector<128x4xf32>
    %19 = arith.maximumf %16, %18 : vector<128x4xf32>
    %20 = vector.shape_cast %19 : vector<128x4xf32> to vector<2x8x8x4xf32>
    %c0_6 = arith.constant 0 : index
    %c0_7 = arith.constant 0 : index
    %c0_8 = arith.constant 0 : index
    %c0_9 = arith.constant 0 : index
    %21 = vector.load %arg3[%c0_6, %c0_7, %c0_8, %c0_9] : memref<2x8x8x4xf32, #tpu.memory_space<vmem>>, vector<2x8x8x4xf32>
    tpu.vector_store %arg3[%c0_6, %c0_7, %c0_8, %c0_9], %20 {strides = array<i32>} : memref<2x8x8x4xf32, #tpu.memory_space<vmem>>, vector<2x8x8x4xf32>,
    return
  }
}

module attributes {stable_mosaic.version = 11 : i64} {
  func.func @conv_gemm_relu_pool_kernel(%arg0: memref<128x36xf32, #tpu.memory_space<vmem>>, %arg1: memref<36x8xf32, #tpu.memory_space<vmem>>, %arg2: memref<1x8xf32, #tpu.memory_space<vmem>>, %arg3: memref<2x4x4x8xf32, #tpu.memory_space<vmem>>) attributes {dimension_semantics = [], scalar_prefetch = 0 : i64, scratch_operands = 0 : i64, tpu.core_type = #tpu.core_type<tc>} {
    %c0 = arith.constant 0 : index
    %c0_0 = arith.constant 0 : index
    %0 = vector.load %arg0[%c0, %c0_0] : memref<128x36xf32, #tpu.memory_space<vmem>>, vector<128x36xf32>
    %c0_1 = arith.constant 0 : index
    %c0_2 = arith.constant 0 : index
    %1 = vector.load %arg1[%c0_1, %c0_2] : memref<36x8xf32, #tpu.memory_space<vmem>>, vector<36x8xf32>
    %cst = arith.constant dense<0.000000e+00> : vector<128x8xf32>
    %2 = tpu.matmul %0, %1, %cst {dimension_numbers = #tpu.dot_dimension_numbers<[1], [0], [0], [1], [0, 0, 1, 1], [], []>} : vector<128x36xf32>, vector<36x8xf32>, vector<128x8xf32> -> vector<128x8xf32>
    %c0_3 = arith.constant 0 : index
    %c0_4 = arith.constant 0 : index
    %3 = vector.load %arg2[%c0_3, %c0_4] : memref<1x8xf32, #tpu.memory_space<vmem>>, vector<1x8xf32>
    %4 = vector.broadcast %3 : vector<1x8xf32> to vector<128x8xf32>
    %5 = arith.addf %2, %4 : vector<128x8xf32>
    %cst_5 = arith.constant 0.000000e+00 : f32
    %6 = vector.broadcast %cst_5 : f32 to vector<128x8xf32>
    %7 = arith.maximumf %5, %6 : vector<128x8xf32>
    %8 = vector.shape_cast %7 : vector<128x8xf32> to vector<8x2x8x8xf32>
    %9 = vector.extract_strided_slice %8 {offsets = [0, 0, 0, 0], sizes = [8, 1, 8, 8], strides = [1, 1, 1, 1]} : vector<8x2x8x8xf32> to vector<8x1x8x8xf32>
    %10 = vector.shape_cast %9 : vector<8x1x8x8xf32> to vector<8x8x8xf32>
    %11 = vector.extract_strided_slice %8 {offsets = [0, 1, 0, 0], sizes = [8, 1, 8, 8], strides = [1, 1, 1, 1]} : vector<8x2x8x8xf32> to vector<8x1x8x8xf32>
    %12 = vector.shape_cast %11 : vector<8x1x8x8xf32> to vector<8x8x8xf32>
    %13 = arith.maximumf %10, %12 : vector<8x8x8xf32>
    %14 = vector.shape_cast %13 : vector<8x8x8xf32> to vector<32x2x8xf32>
    %15 = vector.extract_strided_slice %14 {offsets = [0, 0, 0], sizes = [32, 1, 8], strides = [1, 1, 1]} : vector<32x2x8xf32> to vector<32x1x8xf32>
    %16 = vector.shape_cast %15 : vector<32x1x8xf32> to vector<32x8xf32>
    %17 = vector.extract_strided_slice %14 {offsets = [0, 1, 0], sizes = [32, 1, 8], strides = [1, 1, 1]} : vector<32x2x8xf32> to vector<32x1x8xf32>
    %18 = vector.shape_cast %17 : vector<32x1x8xf32> to vector<32x8xf32>
    %19 = arith.maximumf %16, %18 : vector<32x8xf32>
    %20 = vector.shape_cast %19 : vector<32x8xf32> to vector<2x4x4x8xf32>
    %c0_6 = arith.constant 0 : index
    %c0_7 = arith.constant 0 : index
    %c0_8 = arith.constant 0 : index
    %c0_9 = arith.constant 0 : index
    %21 = vector.load %arg3[%c0_6, %c0_7, %c0_8, %c0_9] : memref<2x4x4x8xf32, #tpu.memory_space<vmem>>, vector<2x4x4x8xf32>
    tpu.vector_store %arg3[%c0_6, %c0_7, %c0_8, %c0_9], %20 {strides = array<i32>} : memref<2x4x4x8xf32, #tpu.memory_space<vmem>>, vector<2x4x4x8xf32>,
    return
  }
}

module attributes {stable_mosaic.version = 11 : i64} {
  func.func @classifier_kernel(%arg0: memref<2x128xf32, #tpu.memory_space<vmem>>, %arg1: memref<128x512xf32, #tpu.memory_space<vmem>>, %arg2: memref<1x512xf32, #tpu.memory_space<vmem>>, %arg3: memref<512x256xf32, #tpu.memory_space<vmem>>, %arg4: memref<1x256xf32, #tpu.memory_space<vmem>>, %arg5: memref<256x2xf32, #tpu.memory_space<vmem>>, %arg6: memref<1x2xf32, #tpu.memory_space<vmem>>, %arg7: memref<2x2xf32, #tpu.memory_space<vmem>>) attributes {dimension_semantics = [], scalar_prefetch = 0 : i64, scratch_operands = 0 : i64, tpu.core_type = #tpu.core_type<tc>} {
    %c0 = arith.constant 0 : index
    %c0_0 = arith.constant 0 : index
    %0 = vector.load %arg0[%c0, %c0_0] : memref<2x128xf32, #tpu.memory_space<vmem>>, vector<2x128xf32>
    %c0_1 = arith.constant 0 : index
    %c0_2 = arith.constant 0 : index
    %1 = vector.load %arg1[%c0_1, %c0_2] : memref<128x512xf32, #tpu.memory_space<vmem>>, vector<128x512xf32>
    %cst = arith.constant dense<0.000000e+00> : vector<2x512xf32>
    %2 = tpu.matmul %0, %1, %cst {dimension_numbers = #tpu.dot_dimension_numbers<[1], [0], [0], [1], [0, 0, 1, 1], [], []>} : vector<2x128xf32>, vector<128x512xf32>, vector<2x512xf32> -> vector<2x512xf32>
    %c0_3 = arith.constant 0 : index
    %c0_4 = arith.constant 0 : index
    %3 = vector.load %arg2[%c0_3, %c0_4] : memref<1x512xf32, #tpu.memory_space<vmem>>, vector<1x512xf32>
    %4 = vector.broadcast %3 : vector<1x512xf32> to vector<2x512xf32>
    %5 = arith.addf %2, %4 : vector<2x512xf32>
    %cst_5 = arith.constant 0.000000e+00 : f32
    %6 = vector.broadcast %cst_5 : f32 to vector<2x512xf32>
    %7 = arith.maximumf %5, %6 : vector<2x512xf32>
    %c0_6 = arith.constant 0 : index
    %c0_7 = arith.constant 0 : index
    %8 = vector.load %arg3[%c0_6, %c0_7] : memref<512x256xf32, #tpu.memory_space<vmem>>, vector<512x256xf32>
    %cst_8 = arith.constant dense<0.000000e+00> : vector<2x256xf32>
    %9 = tpu.matmul %7, %8, %cst_8 {dimension_numbers = #tpu.dot_dimension_numbers<[1], [0], [0], [1], [0, 0, 1, 1], [], []>} : vector<2x512xf32>, vector<512x256xf32>, vector<2x256xf32> -> vector<2x256xf32>
    %c0_9 = arith.constant 0 : index
    %c0_10 = arith.constant 0 : index
    %10 = vector.load %arg4[%c0_9, %c0_10] : memref<1x256xf32, #tpu.memory_space<vmem>>, vector<1x256xf32>
    %11 = vector.broadcast %10 : vector<1x256xf32> to vector<2x256xf32>
    %12 = arith.addf %9, %11 : vector<2x256xf32>
    %cst_11 = arith.constant 0.000000e+00 : f32
    %13 = vector.broadcast %cst_11 : f32 to vector<2x256xf32>
    %14 = arith.maximumf %12, %13 : vector<2x256xf32>
    %c0_12 = arith.constant 0 : index
    %c0_13 = arith.constant 0 : index
    %15 = vector.load %arg5[%c0_12, %c0_13] : memref<256x2xf32, #tpu.memory_space<vmem>>, vector<256x2xf32>
    %cst_14 = arith.constant dense<0.000000e+00> : vector<2x2xf32>
    %16 = tpu.matmul %14, %15, %cst_14 {dimension_numbers = #tpu.dot_dimension_numbers<[1], [0], [0], [1], [0, 0, 1, 1], [], []>} : vector<2x256xf32>, vector<256x2xf32>, vector<2x2xf32> -> vector<2x2xf32>
    %c0_15 = arith.constant 0 : index
    %c0_16 = arith.constant 0 : index
    %17 = vector.load %arg6[%c0_15, %c0_16] : memref<1x2xf32, #tpu.memory_space<vmem>>, vector<1x2xf32>
    %18 = vector.broadcast %17 : vector<1x2xf32> to vector<2x2xf32>
    %19 = arith.addf %16, %18 : vector<2x2xf32>
    %c0_17 = arith.constant 0 : index
    %c0_18 = arith.constant 0 : index
    %20 = vector.load %arg7[%c0_17, %c0_18] : memref<2x2xf32, #tpu.memory_space<vmem>>, vector<2x2xf32>
    tpu.vector_store %arg7[%c0_17, %c0_18], %19 {strides = array<i32>} : memref<2x2xf32, #tpu.memory_space<vmem>>, vector<2x2xf32>,
    return
  }
}

</mosaic_0001>

<bundles_post_ra>
// kernel: custom_cnn_forward.4
= control target key start
LH: loop header
LB: loop body
LE: loop exit
PB: predicated region body
PF: predicated region fallthrough
CT: control target
= control target key end

     0   :  { %vm42_vm0 = vcmask 293888   ;;  %vm91_vm1 = vcmask 1043456   ;;  %v896_v23 = vmov 1983009808   ;;  %v276_v25 = vlaneseq  ;;  %s1149_s1 = inlined_call_operand.vmem [shape: f32[36,8], index: 1, kind: input, shape index: {}]   ;;  %s1150_s0 = inlined_call_operand.vmem [shape: f32[128,36], index: 0, kind: input, shape index: {}]   ;;  %s1151_s2 = inlined_call_operand.vmem [shape: f32[1,8], index: 2, kind: input, shape index: {}]   ;;  %s1152_s3 = inlined_call_operand.vmem [shape: f32[2,4,4,8], index: 3, kind: output, shape index: {}]  }
   0x1   :  { %v30_v0 = vld [vmem:[%s1149_s1] sm:$0xff]  ;;  %v31_v1 = vld [vmem:[%s1149_s1 + $0x8] sm:$0xff]  ;;  %v32_v2 = vld [vmem:[%s1149_s1 + $0x10] sm:$0xff]  ;;  %v274_v24 = vunpack.c.l.s4 %v896_v23  ;;  %vm728_vm2 = vcmask 1041409   ;;  %vm730_vm3 = vcmask 1042434   ;;  %vm732_vm4 = vcmask 1043459  }
   0x2   :  { %v881_v3 = vpack.c.bf16 %v31_v1, %v30_v0  ;;  %v33_v4 = vld [vmem:[%s1149_s1 + $0x18] sm:$0xff]  ;;  %v14_v5 = vld [vmem:[%s1150_s0] sm:$0xff]  ;;  %v15_v9 = vld [vmem:[%s1150_s0 + $0x8] sm:$0xff]  ;;  %v277_v30 = vshrl.u32 %v276_v25, 7  ;;  %vm763_vm5 = vcmask 60416  }
   0x3   :  { %v885_v6 = vpack.c.bf16 %v33_v4, %v32_v2  ;;  %857 = vmatprep.mubr.msk.f32.mxu0 %vm42_vm0, %v14_v5  ;;  %v22_v7 = vld [vmem:[%s1150_s0 + $0x40] sm:$0xff]  ;;  %v23_v10 = vld [vmem:[%s1150_s0 + $0x48] sm:$0xff]  ;;  %v16_v11 = vld [vmem:[%s1150_s0 + $0x10] sm:$0xff]  ;;  %v275_v29 = vunpack.c.0.s8 %v274_v24 }
   0x4   :  { %882 = vmatprep.subr.bf16.mxu0 %v881_v3  ;;  %889 = vmatprep.subr.bf16.mxu1 %v881_v3  ;;  %v34_v8 = vld [vmem:[%s1149_s1 + $0x20] sm:$0xf]  ;;  %v24_v12 = vld [vmem:[%s1150_s0 + $0x50] sm:$0xff]  ;;  %v17_v13 = vld [vmem:[%s1150_s0 + $0x18] sm:$0xff]  ;;  %v1011_v52 = vsub.s32 0, %v277_v30 }
   0x5   :  { %884 = vmatpush3.bf16.msra.mxu0 %v881_v3  ;;  %892 = vmatpush3.bf16.msra.mxu1 %v881_v3  ;;  %v25_v14 = vld [vmem:[%s1150_s0 + $0x58] sm:$0xff]  ;;  %v18_v15 = vld [vmem:[%s1150_s0 + $0x20] sm:$0xff]  ;;  %v19_v17 = vld [vmem:[%s1150_s0 + $0x28] sm:$0xff]  ;;  %v1005_v40 = vsub.s32 %v275_v29, %v277_v30 }
   0x6   :  { %886 = vmatprep.subr.bf16.mxu0 %v885_v6  ;;  %890 = vmatprep.subr.bf16.mxu1 %v885_v6  ;;  %v26_v16 = vld [vmem:[%s1150_s0 + $0x60] sm:$0xff]  ;;  %v27_v18 = vld [vmem:[%s1150_s0 + $0x68] sm:$0xff]  ;;  %v20_v19 = vld [vmem:[%s1150_s0 + $0x30] sm:$0xff] }
   0x7   :  { %869 = vmatprep.mubr.msk.f32.mxu1 %vm42_vm0, %v22_v7  ;;  %v28_v20 = vld [vmem:[%s1150_s0 + $0x70] sm:$0xff]  ;;  %v21_v21 = vld [vmem:[%s1150_s0 + $0x38] sm:$0xff]  ;;  %v999_v26 = vld [vmem:[%s1151_s2] ss:$0 sm:$0xff] }
   0x8   :  { %v29_v22 = vld [vmem:[%s1150_s0 + $0x78] sm:$0xff] }
   0x9   :  { %888 = vmatpush3.bf16.msra.mxu0 %v885_v6  ;;  %893 = vmatpush3.bf16.msra.mxu1 %v885_v6 }
   0xa   :  { %855 = vmatprep.subr.msk.mxu0 %vm91_vm1, %v34_v8  ;;  %891 = vmatprep.subr.msk.mxu1 %vm91_vm1, %v34_v8 }
   0xd   :  { %856 = vmatpush3.msk.msra.mxu0 %vm91_vm1, %v34_v8  ;;  %894 = vmatpush3.msk.msra.mxu1 %vm91_vm1, %v34_v8 }
   0xe   :  { %858 = vmatmul.mubr.msk.f32.vlgmr.msra.gmra.mrb[0].mxu0 %vm42_vm0, %v15_v9  ;;  %870 = vmatmul.mubr.msk.f32.vlgmr.msra.gmra.mrb[0].mxu1 %vm42_vm0, %v23_v10 }
   0xf   :  { %860 = vmatprep.mubr.msk.f32.mxu0 %vm42_vm0, %v16_v11  ;;  %872 = vmatprep.mubr.msk.f32.mxu1 %vm42_vm0, %v24_v12 }
  0x12   :  { %861 = vmatmul.mubr.msk.f32.gmra.mrb[2].mxu0 %vm42_vm0, %v17_v13  ;;  %873 = vmatmul.mubr.msk.f32.gmra.mrb[2].mxu1 %vm42_vm0, %v25_v14 }
  0x13   :  { %863 = vmatprep.mubr.msk.f32.mxu0 %vm42_vm0, %v18_v15  ;;  %875 = vmatprep.mubr.msk.f32.mxu1 %vm42_vm0, %v26_v16 }
  0x16   :  { %864 = vmatmul.mubr.msk.f32.gmra.mrb[4].mxu0 %vm42_vm0, %v19_v17  ;;  %876 = vmatmul.mubr.msk.f32.gmra.mrb[4].mxu1 %vm42_vm0, %v27_v18 }
  0x17   :  { %866 = vmatprep.mubr.msk.f32.mxu0 %vm42_vm0, %v20_v19  ;;  %878 = vmatprep.mubr.msk.f32.mxu1 %vm42_vm0, %v28_v20 }
  0x1a   :  { %867 = vmatmul.mubr.msk.f32.gmra.mrb[6].mxu0 %vm42_vm0, %v21_v21  ;;  %879 = vmatmul.mubr.msk.f32.gmra.mrb[6].mxu1 %vm42_vm0, %v29_v22 }
  0xe1   :  { %v859_v27 = vpop.f32.mrb[0].mxu0  ;;  %v871_v28 = vpop.f32.mrb[0].mxu1 }
  0xe2   :  { %v167_v31 = vadd.f32 %v859_v27, %v999_v26  ;;  %v207_v32 = vadd.f32 %v871_v28, %v999_v26  ;;  %v161_v33 = vpop.f32.mrb[1].mxu0  ;;  %v201_v34 = vpop.f32.mrb[1].mxu1 }
  0xe3   :  { %v162_v35 = vadd.f32 %v999_v26, %v161_v33  ;;  %v202_v36 = vadd.f32 %v999_v26, %v201_v34 }
  0xe4   :  { %v241_v37 = vmax.f32 %v167_v31, 0.0  ;;  %v249_v38 = vmax.f32 %v207_v32, 0.0 }
  0xe5   :  { %v240_v39 = vmax.f32 %v162_v35, 0.0  ;;  %v248_v41 = vmax.f32 %v202_v36, 0.0  ;;  %v862_v42 = vpop.f32.mrb[2].mxu0  ;;  %v874_v43 = vpop.f32.mrb[2].mxu1 }
  0xe6   :  { %v177_v44 = vadd.f32 %v862_v42, %v999_v26  ;;  %v217_v45 = vadd.f32 %v874_v43, %v999_v26  ;;  %v171_v46 = vpop.f32.mrb[3].mxu0  ;;  %v211_v47 = vpop.f32.mrb[3].mxu1 }
  0xe7   :  { %v256_v48 = vmax.f32 %v240_v39, %v241_v37  ;;  %v260_v49 = vmax.f32 %v248_v41, %v249_v38  ;;  %v172_v50 = vadd.f32 %v999_v26, %v171_v46  ;;  %v212_v51 = vadd.f32 %v999_v26, %v211_v47 }
  0xe8   :  { %v243_v53 = vmax.f32 %v177_v44, 0.0  ;;  %v251_v54 = vmax.f32 %v217_v45, 0.0 }
  0xe9   :  { %v272_v55 = vcombine.high %v256_v48, %v256_v48  ;;  %v279_v56 = vrot.slane %v256_v48, %v1005_v40  ;;  %v340_v57 = vcombine.high %v260_v49, %v260_v49  ;;  %v347_v58 = vrot.slane %v260_v49, %v1005_v40  ;;  %v865_v59 = vpop.f32.mrb[4].mxu0  ;;  %v877_v60 = vpop.f32.mrb[4].mxu1 }
  0xea   :  { %v242_v61 = vmax.f32 %v172_v50, 0.0  ;;  %v250_v62 = vmax.f32 %v212_v51, 0.0  ;;  %v1016_v63 = vadd.f32 %v865_v59, %v999_v26  ;;  %v1019_v0 = vadd.f32 %v877_v60, %v999_v26  ;;  %v1021_v1 = vpop.f32.mrb[5].mxu0  ;;  %v1023_v2 = vpop.f32.mrb[5].mxu1 }
  0xeb   :  { %v286_v3 = vrot.slane %v272_v55, %v1005_v40  ;;  %v287_v4 = vcombine.high %v279_v56, %v279_v56  ;;  %v794_v5 = vrot.slane %v279_v56, 9  ;;  %v354_v6 = vrot.slane %v340_v57, %v1005_v40 }
  0xec   :  { %v355_v7 = vcombine.high %v347_v58, %v347_v58  ;;  %v810_v8 = vrot.slane %v347_v58, 9  ;;  %v257_v9 = vmax.f32 %v242_v61, %v243_v53  ;;  %v261_v10 = vmax.f32 %v250_v62, %v251_v54 }
  0xed   :  { %v288_v11 = vcombine.high %v286_v3, %v286_v3  ;;  %v795_v12 = vrot.slane %v287_v4, 9  ;;  %v796_v13 = vrot.slane %v286_v3, 9  ;;  %v536_v14 = vmax.f32 %v279_v56, %v794_v5  ;;  %v1027_v15 = vpop.f32.mrb[6].mxu0  ;;  %v1029_v16 = vpop.f32.mrb[6].mxu1 }
  0xee   :  { %v356_v17 = vcombine.high %v354_v6, %v354_v6  ;;  %v811_v18 = vrot.slane %v355_v7, 9  ;;  %v812_v19 = vrot.slane %v354_v6, 9  ;;  %v552_v20 = vmax.f32 %v347_v58, %v810_v8  ;;  %v1031_v21 = vpop.f32.mrb[7].mxu0  ;;  %v1033_v22 = vpop.f32.mrb[7].mxu1 }
  0xef   :  { %v797_v23 = vrot.slane %v288_v11, 9  ;;  %v537_v24 = vmax.f32 %v287_v4, %v795_v12  ;;  %v538_v25 = vmax.f32 %v286_v3, %v796_v13  ;;  %v603_v27 = vrot.slane %v536_v14, %v1011_v52 }
  0xf0   :  { %v813_v28 = vrot.slane %v356_v17, 9  ;;  %v553_v29 = vmax.f32 %v355_v7, %v811_v18  ;;  %v554_v30 = vmax.f32 %v354_v6, %v812_v19  ;;  %v667_v31 = vrot.slane %v552_v20, %v1011_v52 }
  0xf1   :  { %v539_v32 = vmax.f32 %v288_v11, %v797_v23  ;;  %v607_v33 = vrot.slane %v537_v24, %v1011_v52  ;;  %v611_v34 = vrot.slane %v538_v25, %v1011_v52  ;;  %v289_v35 = vcombine.high %v257_v9, %v257_v9 }
  0xf2   :  { %v555_v36 = vmax.f32 %v356_v17, %v813_v28  ;;  %v671_v37 = vrot.slane %v553_v29, %v1011_v52  ;;  %v675_v38 = vrot.slane %v554_v30, %v1011_v52  ;;  %v296_v39 = vrot.slane %v257_v9, %v1005_v40 }
  0xf3   :  { %v615_v41 = vrot.slane %v539_v32, %v1011_v52  ;;  %v729_v42 = vsel %vm728_vm2, %v607_v33, %v603_v27  ;;  %v303_v43 = vrot.slane %v289_v35, %v1005_v40  ;;  %v357_v44 = vcombine.high %v261_v10, %v261_v10 }
  0xf4   :  { %v731_v45 = vsel %vm730_vm3, %v611_v34, %v729_v42  ;;  %v679_v46 = vrot.slane %v555_v36, %v1011_v52  ;;  %v743_v47 = vsel %vm728_vm2, %v671_v37, %v667_v31  ;;  %v304_v48 = vcombine.high %v296_v39, %v296_v39 }
  0xf5   :  { %v733_v49 = vsel %vm732_vm4, %v615_v41, %v731_v45  ;;  %v744_v50 = vsel %vm730_vm3, %v675_v38, %v743_v47  ;;  %v305_v51 = vcombine.high %v303_v43, %v303_v43  ;;  %v798_v53 = vrot.slane %v296_v39, 9 }
  0xf6   :  { %764 = vst.msk [vmem:[%s1152_s3] sm:$0xf] %vm763_vm5, %v733_v49  ;;  %v745_v54 = vsel %vm732_vm4, %v679_v46, %v744_v50  ;;  %v799_v55 = vrot.slane %v304_v48, 9  ;;  %v800_v56 = vrot.slane %v303_v43, 9  ;;  %v364_v57 = vrot.slane %v261_v10, %v1005_v40 }
  0xf7   :  { %768 = vst.msk [vmem:[%s1152_s3 + $0x10] sm:$0xf] %vm763_vm5, %v745_v54  ;;  %v801_v58 = vrot.slane %v305_v51, 9  ;;  %v540_v59 = vmax.f32 %v296_v39, %v798_v53  ;;  %v371_v60 = vrot.slane %v357_v44, %v1005_v40  ;;  %v245_v61 = vmax.f32 %v1016_v63, 0.0 }
  0xf8   :  { %v541_v62 = vmax.f32 %v304_v48, %v799_v55  ;;  %v542_v3 = vmax.f32 %v303_v43, %v800_v56  ;;  %v372_v4 = vcombine.high %v364_v57, %v364_v57  ;;  %v814_v5 = vrot.slane %v364_v57, 9 }
  0xf9   :  { %v543_v6 = vmax.f32 %v305_v51, %v801_v58  ;;  %v619_v7 = vrot.slane %v540_v59, %v1011_v52  ;;  %v373_v8 = vcombine.high %v371_v60, %v371_v60  ;;  %v816_v9 = vrot.slane %v371_v60, 9 }
  0xfa   :  { %v623_v10 = vrot.slane %v541_v62, %v1011_v52  ;;  %v627_v11 = vrot.slane %v542_v3, %v1011_v52  ;;  %v815_v12 = vrot.slane %v372_v4, 9  ;;  %v556_v13 = vmax.f32 %v364_v57, %v814_v5 }
  0xfb   :  { %v631_v14 = vrot.slane %v543_v6, %v1011_v52  ;;  %v817_v17 = vrot.slane %v373_v8, 9  ;;  %v558_v18 = vmax.f32 %v371_v60, %v816_v9  ;;  %v253_v63 = vmax.f32 %v1019_v0, 0.0 }
  0xfc   :  { %v734_v19 = vsel %vm728_vm2, %v623_v10, %v619_v7  ;;  %v557_v20 = vmax.f32 %v372_v4, %v815_v12  ;;  %v683_v23 = vrot.slane %v556_v13, %v1011_v52  ;;  %v182_v24 = vadd.f32 %v999_v26, %v1021_v1 }
  0xfd   :  { %v735_v25 = vsel %vm730_vm3, %v627_v11, %v734_v19  ;;  %v559_v27 = vmax.f32 %v373_v8, %v817_v17  ;;  %v691_v28 = vrot.slane %v558_v18, %v1011_v52  ;;  %v222_v29 = vadd.f32 %v999_v26, %v1023_v2 }
  0xfe   :  { %v736_v30 = vsel %vm732_vm4, %v631_v14, %v735_v25  ;;  %v687_v0 = vrot.slane %v557_v20, %v1011_v52  ;;  %v244_v31 = vmax.f32 %v182_v24, 0.0  ;;  %v197_v32 = vadd.f32 %v1027_v15, %v999_v26 }
  0xff   :  { %765 = vst.msk [vmem:[%s1152_s3 + $0x4] sm:$0xf] %vm763_vm5, %v736_v30  ;;  %v695_v1 = vrot.slane %v559_v27, %v1011_v52  ;;  %v252_v33 = vmax.f32 %v222_v29, 0.0  ;;  %v237_v34 = vadd.f32 %v1029_v16, %v999_v26  ;;  %v192_v2 = vadd.f32 %v999_v26, %v1031_v21 }
 0x100   :  { %v746_v35 = vsel %vm728_vm2, %v687_v0, %v683_v23  ;;  %v258_v36 = vmax.f32 %v244_v31, %v245_v61  ;;  %v247_v37 = vmax.f32 %v197_v32, 0.0  ;;  %v232_v15 = vadd.f32 %v999_v26, %v1033_v22 }
 0x101   :  { %v747_v38 = vsel %vm730_vm3, %v691_v28, %v746_v35  ;;  %v262_v39 = vmax.f32 %v252_v33, %v253_v63  ;;  %v255_v41 = vmax.f32 %v237_v34, 0.0  ;;  %v246_v42 = vmax.f32 %v192_v2, 0.0 }
 0x102   :  { %v748_v43 = vsel %vm732_vm4, %v695_v1, %v747_v38  ;;  %v306_v44 = vcombine.high %v258_v36, %v258_v36  ;;  %v313_v16 = vrot.slane %v258_v36, %v1005_v40  ;;  %v254_v45 = vmax.f32 %v232_v15, 0.0 }
 0x103   :  { %769 = vst.msk [vmem:[%s1152_s3 + $0x14] sm:$0xf] %vm763_vm5, %v748_v43  ;;  %v374_v21 = vcombine.high %v262_v39, %v262_v39  ;;  %v381_v46 = vrot.slane %v262_v39, %v1005_v40  ;;  %v259_v26 = vmax.f32 %v246_v42, %v247_v37 }
 0x104   :  { %v320_v22 = vrot.slane %v306_v44, %v1005_v40  ;;  %v321_v47 = vcombine.high %v313_v16, %v313_v16  ;;  %v802_v48 = vrot.slane %v313_v16, 9  ;;  %v263_v49 = vmax.f32 %v254_v45, %v255_v41 }
 0x105   :  { %v388_v50 = vrot.slane %v374_v21, %v1005_v40  ;;  %v389_v51 = vcombine.high %v381_v46, %v381_v46  ;;  %v818_v53 = vrot.slane %v381_v46, 9  ;;  %v323_v54 = vcombine.high %v259_v26, %v259_v26 }
 0x106   :  { %v322_v55 = vcombine.high %v320_v22, %v320_v22  ;;  %v803_v56 = vrot.slane %v321_v47, 9  ;;  %v804_v57 = vrot.slane %v320_v22, 9  ;;  %v544_v58 = vmax.f32 %v313_v16, %v802_v48 }
 0x107   :  { %v390_v59 = vcombine.high %v388_v50, %v388_v50  ;;  %v819_v60 = vrot.slane %v389_v51, 9  ;;  %v820_v61 = vrot.slane %v388_v50, 9  ;;  %v560_v62 = vmax.f32 %v381_v46, %v818_v53 }
 0x108   :  { %v805_v3 = vrot.slane %v322_v55, 9  ;;  %v545_v4 = vmax.f32 %v321_v47, %v803_v56  ;;  %v546_v5 = vmax.f32 %v320_v22, %v804_v57  ;;  %v635_v6 = vrot.slane %v544_v58, %v1011_v52 }
 0x109   :  { %v821_v7 = vrot.slane %v390_v59, 9  ;;  %v561_v8 = vmax.f32 %v389_v51, %v819_v60  ;;  %v562_v9 = vmax.f32 %v388_v50, %v820_v61  ;;  %v699_v10 = vrot.slane %v560_v62, %v1011_v52 }
 0x10a   :  { %v547_v11 = vmax.f32 %v322_v55, %v805_v3  ;;  %v639_v12 = vrot.slane %v545_v4, %v1011_v52  ;;  %v643_v13 = vrot.slane %v546_v5, %v1011_v52  ;;  %v330_v14 = vrot.slane %v259_v26, %v1005_v40 }
 0x10b   :  { %v563_v17 = vmax.f32 %v390_v59, %v821_v7  ;;  %v703_v18 = vrot.slane %v561_v8, %v1011_v52  ;;  %v707_v63 = vrot.slane %v562_v9, %v1011_v52  ;;  %v337_v19 = vrot.slane %v323_v54, %v1005_v40 }
 0x10c   :  { %v647_v20 = vrot.slane %v547_v11, %v1011_v52  ;;  %v737_v23 = vsel %vm728_vm2, %v639_v12, %v635_v6  ;;  %v338_v24 = vcombine.high %v330_v14, %v330_v14  ;;  %v806_v25 = vrot.slane %v330_v14, 9 }
 0x10d   :  { %v738_v27 = vsel %vm730_vm3, %v643_v13, %v737_v23  ;;  %v711_v28 = vrot.slane %v563_v17, %v1011_v52  ;;  %v749_v29 = vsel %vm728_vm2, %v703_v18, %v699_v10  ;;  %v339_v30 = vcombine.high %v337_v19, %v337_v19 }
 0x10e   :  { %v739_v0 = vsel %vm732_vm4, %v647_v20, %v738_v27  ;;  %v750_v31 = vsel %vm730_vm3, %v707_v63, %v749_v29  ;;  %v807_v32 = vrot.slane %v338_v24, 9  ;;  %v808_v1 = vrot.slane %v337_v19, 9 }
 0x10f   :  { %766 = vst.msk [vmem:[%s1152_s3 + $0x8] sm:$0xf] %vm763_vm5, %v739_v0  ;;  %v751_v33 = vsel %vm732_vm4, %v711_v28, %v750_v31  ;;  %v809_v34 = vrot.slane %v339_v30, 9  ;;  %v548_v2 = vmax.f32 %v330_v14, %v806_v25  ;;  %v391_v35 = vcombine.high %v263_v49, %v263_v49 }
 0x110   :  { %770 = vst.msk [vmem:[%s1152_s3 + $0x18] sm:$0xf] %vm763_vm5, %v751_v33  ;;  %v549_v36 = vmax.f32 %v338_v24, %v807_v32  ;;  %v550_v37 = vmax.f32 %v337_v19, %v808_v1  ;;  %v398_v15 = vrot.slane %v263_v49, %v1005_v40 }
 0x111   :  { %v551_v38 = vmax.f32 %v339_v30, %v809_v34  ;;  %v651_v39 = vrot.slane %v548_v2, %v1011_v52  ;;  %v405_v41 = vrot.slane %v391_v35, %v1005_v40 }
 0x112   :  { %v655_v42 = vrot.slane %v549_v36, %v1011_v52  ;;  %v659_v43 = vrot.slane %v550_v37, %v1011_v52  ;;  %v406_v44 = vcombine.high %v398_v15, %v398_v15  ;;  %v822_v16 = vrot.slane %v398_v15, 9 }
 0x113   :  { %v663_v45 = vrot.slane %v551_v38, %v1011_v52  ;;  %v407_v21 = vcombine.high %v405_v41, %v405_v41  ;;  %v824_v46 = vrot.slane %v405_v41, 9 }
 0x114   :  { %v740_v26 = vsel %vm728_vm2, %v655_v42, %v651_v39  ;;  %v823_v22 = vrot.slane %v406_v44, 9  ;;  %v564_v47 = vmax.f32 %v398_v15, %v822_v16 }
 0x115   :  { %v741_v48 = vsel %vm730_vm3, %v659_v43, %v740_v26  ;;  %v825_v49 = vrot.slane %v407_v21, 9  ;;  %v566_v50 = vmax.f32 %v405_v41, %v824_v46 }
 0x116   :  { %v742_v40 = vsel %vm732_vm4, %v663_v45, %v741_v48  ;;  %v565_v51 = vmax.f32 %v406_v44, %v823_v22  ;;  %v715_v55 = vrot.slane %v564_v47, %v1011_v52 }
 0x117   :  { %767 = vst.msk [vmem:[%s1152_s3 + $0xc] sm:$0xf] %vm763_vm5, %v742_v40  ;;  %v567_v53 = vmax.f32 %v407_v21, %v825_v49  ;;  %v723_v54 = vrot.slane %v566_v50, %v1011_v52 }
 0x118   :  { %v719_v56 = vrot.slane %v565_v51, %v1011_v52 }
 0x119   :  { %v727_v57 = vrot.slane %v567_v53, %v1011_v52 }
 0x11a   :  { %v752_v58 = vsel %vm728_vm2, %v719_v56, %v715_v55 }
 0x11b   :  { %v753_v59 = vsel %vm730_vm3, %v723_v54, %v752_v58 }
 0x11c   :  { %v754_v60 = vsel %vm732_vm4, %v727_v57, %v753_v59 }
 0x11d   :  { %771 = vst.msk [vmem:[%s1152_s3 + $0x1c] sm:$0xf] %vm763_vm5, %v754_v60 }

// kernel: custom_cnn_forward.3
= control target key start
LH: loop header
LB: loop body
LE: loop exit
PB: predicated region body
PF: predicated region fallthrough
CT: control target
= control target key end

     0   :  { %vm282_vm0 = vcmask 1042432   ;;  %vm89_vm1 = vcmask 220160   ;;  %vm3162_vm2 = vmmov 1   ;;  %vm2623_vm4 = vcmask 1041409   ;;  %s4303_s1 = inlined_call_operand.vmem [shape: f32[27,4], index: 1, kind: input, shape index: {}]   ;;  %s4304_s0 = inlined_call_operand.vmem [shape: f32[512,27], index: 0, kind: input, shape index: {}]   ;;  %s4305_s2 = inlined_call_operand.vmem [shape: f32[1,4], index: 2, kind: input, shape index: {}]   ;;  %s4306_s3 = inlined_call_operand.vmem [shape: f32[2,8,8,4], index: 3, kind: output, shape index: {}]  }
   0x1   :  { %v78_v0 = vld [vmem:[%s4303_s1] sm:$0xff]  ;;  %v79_v1 = vld [vmem:[%s4303_s1 + $0x8] sm:$0xff]  ;;  %v80_v2 = vld [vmem:[%s4303_s1 + $0x10] sm:$0xff]  ;;  %vm2625_vm5 = vcmask 1042434   ;;  %vm2627_vm6 = vcmask 1043459   ;;  %vm2629_vm7 = vcmask 1044484  }
   0x2   :  { %v3145_v3 = vpack.c.bf16 %v79_v1, %v78_v0  ;;  %v81_v4 = vld [vmem:[%s4303_s1 + $0x18] sm:$0x7]  ;;  %v14_v5 = vld [vmem:[%s4304_s0] sm:$0xff]  ;;  %vm3150_vm3 = vmpackc.low %vm282_vm0, %vm3162_vm2  ;;  %vm2631_vm8 = vcmask 1045509   ;;  %vm2633_vm9 = vcmask 1046534   ;;  %vm2635_vm10 = vcmask 1047559  }
   0x3   :  { %v3149_v6 = vpack.c.bf16 %v81_v4, %v80_v2  ;;  %3049 = vmatprep.mubr.msk.f32.mxu0 %vm89_vm1, %v14_v5  ;;  %v46_v7 = vld [vmem:[%s4304_s0 + $0x100] sm:$0xff]  ;;  %v15_v8 = vld [vmem:[%s4304_s0 + $0x8] sm:$0xff]  ;;  %v16_v10 = vld [vmem:[%s4304_s0 + $0x10] sm:$0xff]  ;;  %vm2758_vm11 = vcmask 31744  }
   0x4   :  { %3146 = vmatprep.subr.bf16.mxu0 %v3145_v3  ;;  %3155 = vmatprep.subr.bf16.mxu1 %v3145_v3  ;;  %v47_v9 = vld [vmem:[%s4304_s0 + $0x108] sm:$0xff]  ;;  %v48_v11 = vld [vmem:[%s4304_s0 + $0x110] sm:$0xff]  ;;  %v17_v12 = vld [vmem:[%s4304_s0 + $0x18] sm:$0xff] }
   0x5   :  { %3148 = vmatpush3.bf16.msra.mxu0 %v3145_v3  ;;  %3157 = vmatpush3.bf16.msra.mxu1 %v3145_v3  ;;  %v49_v13 = vld [vmem:[%s4304_s0 + $0x118] sm:$0xff]  ;;  %v18_v14 = vld [vmem:[%s4304_s0 + $0x20] sm:$0xff]  ;;  %v19_v16 = vld [vmem:[%s4304_s0 + $0x28] sm:$0xff] }
   0x6   :  { %3151 = vmatprep.subr.msk.bf16.mxu0 %vm3150_vm3, %v3149_v6  ;;  %3156 = vmatprep.subr.msk.bf16.mxu1 %vm3150_vm3, %v3149_v6  ;;  %v50_v15 = vld [vmem:[%s4304_s0 + $0x120] sm:$0xff]  ;;  %v51_v17 = vld [vmem:[%s4304_s0 + $0x128] sm:$0xff]  ;;  %v20_v18 = vld [vmem:[%s4304_s0 + $0x30] sm:$0xff] }
   0x7   :  { %3097 = vmatprep.mubr.msk.f32.mxu1 %vm89_vm1, %v46_v7  ;;  %v52_v19 = vld [vmem:[%s4304_s0 + $0x130] sm:$0xff]  ;;  %v21_v20 = vld [vmem:[%s4304_s0 + $0x38] sm:$0xff]  ;;  %v22_v22 = vld [vmem:[%s4304_s0 + $0x40] sm:$0xff] }
   0x8   :  { %v53_v21 = vld [vmem:[%s4304_s0 + $0x138] sm:$0xff]  ;;  %v54_v23 = vld [vmem:[%s4304_s0 + $0x140] sm:$0xff]  ;;  %v23_v24 = vld [vmem:[%s4304_s0 + $0x48] sm:$0xff] }
   0x9   :  { %3154 = vmatpush3.bf16.msk.msra.mxu0 %vm3150_vm3, %v3149_v6  ;;  %3158 = vmatpush3.bf16.msk.msra.mxu1 %vm3150_vm3, %v3149_v6  ;;  %v55_v25 = vld [vmem:[%s4304_s0 + $0x148] sm:$0xff]  ;;  %v24_v26 = vld [vmem:[%s4304_s0 + $0x50] sm:$0xff]  ;;  %v25_v28 = vld [vmem:[%s4304_s0 + $0x58] sm:$0xff]  ;;  %v3163_v6 = vmov 1983009808  }
   0xa   :  { %v56_v27 = vld [vmem:[%s4304_s0 + $0x150] sm:$0xff]  ;;  %v57_v29 = vld [vmem:[%s4304_s0 + $0x158] sm:$0xff]  ;;  %v26_v30 = vld [vmem:[%s4304_s0 + $0x60] sm:$0xff]  ;;  %v801_v7 = vunpack.c.l.s4 %v3163_v6 }
   0xb   :  { %v58_v31 = vld [vmem:[%s4304_s0 + $0x160] sm:$0xff]  ;;  %v27_v32 = vld [vmem:[%s4304_s0 + $0x68] sm:$0xff]  ;;  %v28_v34 = vld [vmem:[%s4304_s0 + $0x70] sm:$0xff] }
   0xc   :  { %3050 = vmatmul.mubr.msk.f32.vlgmr.msra.gmra.mrb[0].mxu0 %vm89_vm1, %v15_v8  ;;  %3098 = vmatmul.mubr.msk.f32.vlgmr.msra.gmra.mrb[0].mxu1 %vm89_vm1, %v47_v9  ;;  %v59_v33 = vld [vmem:[%s4304_s0 + $0x168] sm:$0xff]  ;;  %v60_v35 = vld [vmem:[%s4304_s0 + $0x170] sm:$0xff]  ;;  %v29_v36 = vld [vmem:[%s4304_s0 + $0x78] sm:$0xff]  ;;  %v803_v8 = vlaneseq }
   0xd   :  { %3052 = vmatprep.mubr.msk.f32.mxu0 %vm89_vm1, %v16_v10  ;;  %3100 = vmatprep.mubr.msk.f32.mxu1 %vm89_vm1, %v48_v11  ;;  %v61_v37 = vld [vmem:[%s4304_s0 + $0x178] sm:$0xff]  ;;  %v30_v38 = vld [vmem:[%s4304_s0 + $0x80] sm:$0xff]  ;;  %v31_v40 = vld [vmem:[%s4304_s0 + $0x88] sm:$0xff] }
   0xe   :  { %v62_v39 = vld [vmem:[%s4304_s0 + $0x180] sm:$0xff]  ;;  %v63_v41 = vld [vmem:[%s4304_s0 + $0x188] sm:$0xff]  ;;  %v32_v42 = vld [vmem:[%s4304_s0 + $0x90] sm:$0xff] }
   0xf   :  { %v64_v43 = vld [vmem:[%s4304_s0 + $0x190] sm:$0xff]  ;;  %v33_v44 = vld [vmem:[%s4304_s0 + $0x98] sm:$0xff]  ;;  %v34_v46 = vld [vmem:[%s4304_s0 + $0xa0] sm:$0xff] }
  0x10   :  { %3053 = vmatmul.mubr.msk.f32.gmra.mrb[2].mxu0 %vm89_vm1, %v17_v12  ;;  %3101 = vmatmul.mubr.msk.f32.gmra.mrb[2].mxu1 %vm89_vm1, %v49_v13  ;;  %v65_v45 = vld [vmem:[%s4304_s0 + $0x198] sm:$0xff]  ;;  %v66_v47 = vld [vmem:[%s4304_s0 + $0x1a0] sm:$0xff]  ;;  %v35_v48 = vld [vmem:[%s4304_s0 + $0xa8] sm:$0xff] }
  0x11   :  { %3055 = vmatprep.mubr.msk.f32.mxu0 %vm89_vm1, %v18_v14  ;;  %3103 = vmatprep.mubr.msk.f32.mxu1 %vm89_vm1, %v50_v15  ;;  %v67_v49 = vld [vmem:[%s4304_s0 + $0x1a8] sm:$0xff]  ;;  %v36_v50 = vld [vmem:[%s4304_s0 + $0xb0] sm:$0xff]  ;;  %v37_v52 = vld [vmem:[%s4304_s0 + $0xb8] sm:$0xff]  ;;  %v802_v14 = vunpack.c.0.s8 %v801_v7  ;;  %v804_v15 = vshrl.u32 %v803_v8, 7 }
  0x12   :  { %v68_v51 = vld [vmem:[%s4304_s0 + $0x1b0] sm:$0xff]  ;;  %v69_v53 = vld [vmem:[%s4304_s0 + $0x1b8] sm:$0xff]  ;;  %v38_v54 = vld [vmem:[%s4304_s0 + $0xc0] sm:$0xff] }
  0x13   :  { %v70_v55 = vld [vmem:[%s4304_s0 + $0x1c0] sm:$0xff]  ;;  %v39_v56 = vld [vmem:[%s4304_s0 + $0xc8] sm:$0xff]  ;;  %v40_v58 = vld [vmem:[%s4304_s0 + $0xd0] sm:$0xff] }
  0x14   :  { %3056 = vmatmul.mubr.msk.f32.gmra.mrb[4].mxu0 %vm89_vm1, %v19_v16  ;;  %3104 = vmatmul.mubr.msk.f32.gmra.mrb[4].mxu1 %vm89_vm1, %v51_v17  ;;  %v71_v57 = vld [vmem:[%s4304_s0 + $0x1c8] sm:$0xff]  ;;  %v72_v59 = vld [vmem:[%s4304_s0 + $0x1d0] sm:$0xff]  ;;  %v41_v60 = vld [vmem:[%s4304_s0 + $0xd8] sm:$0xff] }
  0x15   :  { %3058 = vmatprep.mubr.msk.f32.mxu0 %vm89_vm1, %v20_v18  ;;  %3106 = vmatprep.mubr.msk.f32.mxu1 %vm89_vm1, %v52_v19  ;;  %v73_v61 = vld [vmem:[%s4304_s0 + $0x1d8] sm:$0xff]  ;;  %v42_v62 = vld [vmem:[%s4304_s0 + $0xe0] sm:$0xff]  ;;  %v43_v0 = vld [vmem:[%s4304_s0 + $0xe8] sm:$0xff] }
  0x16   :  { %v74_v63 = vld [vmem:[%s4304_s0 + $0x1e0] sm:$0xff]  ;;  %v75_v1 = vld [vmem:[%s4304_s0 + $0x1e8] sm:$0xff]  ;;  %v44_v2 = vld [vmem:[%s4304_s0 + $0xf0] sm:$0xff] }
  0x17   :  { %v76_v3 = vld [vmem:[%s4304_s0 + $0x1f0] sm:$0xff]  ;;  %v45_v4 = vld [vmem:[%s4304_s0 + $0xf8] sm:$0xff]  ;;  %v3455_v10 = vld [vmem:[%s4305_s2] ss:$0 sm:$0xff] }
  0x18   :  { %3059 = vmatmul.mubr.msk.f32.gmra.mrb[6].mxu0 %vm89_vm1, %v21_v20  ;;  %3107 = vmatmul.mubr.msk.f32.gmra.mrb[6].mxu1 %vm89_vm1, %v53_v21  ;;  %v77_v5 = vld [vmem:[%s4304_s0 + $0x1f8] sm:$0xff] }
  0x19   :  { %3061 = vmatprep.mubr.msk.f32.mxu0 %vm89_vm1, %v22_v22  ;;  %3109 = vmatprep.mubr.msk.f32.mxu1 %vm89_vm1, %v54_v23 }
  0x1c   :  { %3062 = vmatmul.mubr.msk.f32.gmra.mrb[8].mxu0 %vm89_vm1, %v23_v24  ;;  %3110 = vmatmul.mubr.msk.f32.gmra.mrb[8].mxu1 %vm89_vm1, %v55_v25 }
  0x1d   :  { %3064 = vmatprep.mubr.msk.f32.mxu0 %vm89_vm1, %v24_v26  ;;  %3112 = vmatprep.mubr.msk.f32.mxu1 %vm89_vm1, %v56_v27  ;;  %v3463_v26 = vsub.s32 %v802_v14, %v804_v15 }
  0x20   :  { %3065 = vmatmul.mubr.msk.f32.gmra.mrb[10].mxu0 %vm89_vm1, %v25_v28  ;;  %3113 = vmatmul.mubr.msk.f32.gmra.mrb[10].mxu1 %vm89_vm1, %v57_v29 }
  0x21   :  { %3067 = vmatprep.mubr.msk.f32.mxu0 %vm89_vm1, %v26_v30  ;;  %3115 = vmatprep.mubr.msk.f32.mxu1 %vm89_vm1, %v58_v31 }
  0x24   :  { %3068 = vmatmul.mubr.msk.f32.gmra.mrb[12].mxu0 %vm89_vm1, %v27_v32  ;;  %3116 = vmatmul.mubr.msk.f32.gmra.mrb[12].mxu1 %vm89_vm1, %v59_v33 }
  0x25   :  { %3070 = vmatprep.mubr.msk.f32.mxu0 %vm89_vm1, %v28_v34  ;;  %3118 = vmatprep.mubr.msk.f32.mxu1 %vm89_vm1, %v60_v35 }
  0x28   :  { %3071 = vmatmul.mubr.msk.f32.gmra.mrb[14].mxu0 %vm89_vm1, %v29_v36  ;;  %3119 = vmatmul.mubr.msk.f32.gmra.mrb[14].mxu1 %vm89_vm1, %v61_v37 }
  0x29   :  { %3073 = vmatprep.mubr.msk.f32.mxu0 %vm89_vm1, %v30_v38  ;;  %3121 = vmatprep.mubr.msk.f32.mxu1 %vm89_vm1, %v62_v39 }
  0x2c   :  { %3074 = vmatmul.mubr.msk.f32.gmra.mrb[16].mxu0 %vm89_vm1, %v31_v40  ;;  %3122 = vmatmul.mubr.msk.f32.gmra.mrb[16].mxu1 %vm89_vm1, %v63_v41  ;;  %v3467_v40 = vsub.s32 0, %v804_v15 }
  0x2d   :  { %3076 = vmatprep.mubr.msk.f32.mxu0 %vm89_vm1, %v32_v42  ;;  %3124 = vmatprep.mubr.msk.f32.mxu1 %vm89_vm1, %v64_v43 }
  0x30   :  { %3077 = vmatmul.mubr.msk.f32.gmra.mrb[18].mxu0 %vm89_vm1, %v33_v44  ;;  %3125 = vmatmul.mubr.msk.f32.gmra.mrb[18].mxu1 %vm89_vm1, %v65_v45 }
  0x31   :  { %3079 = vmatprep.mubr.msk.f32.mxu0 %vm89_vm1, %v34_v46  ;;  %3127 = vmatprep.mubr.msk.f32.mxu1 %vm89_vm1, %v66_v47 }
  0x34   :  { %3080 = vmatmul.mubr.msk.f32.gmra.mrb[20].mxu0 %vm89_vm1, %v35_v48  ;;  %3128 = vmatmul.mubr.msk.f32.gmra.mrb[20].mxu1 %vm89_vm1, %v67_v49 }
  0x35   :  { %3082 = vmatprep.mubr.msk.f32.mxu0 %vm89_vm1, %v36_v50  ;;  %3130 = vmatprep.mubr.msk.f32.mxu1 %vm89_vm1, %v68_v51 }
  0x38   :  { %3083 = vmatmul.mubr.msk.f32.gmra.mrb[22].mxu0 %vm89_vm1, %v37_v52  ;;  %3131 = vmatmul.mubr.msk.f32.gmra.mrb[22].mxu1 %vm89_vm1, %v69_v53 }
  0x39   :  { %3085 = vmatprep.mubr.msk.f32.mxu0 %vm89_vm1, %v38_v54  ;;  %3133 = vmatprep.mubr.msk.f32.mxu1 %vm89_vm1, %v70_v55 }
  0x3c   :  { %3086 = vmatmul.mubr.msk.f32.gmra.mrb[24].mxu0 %vm89_vm1, %v39_v56  ;;  %3134 = vmatmul.mubr.msk.f32.gmra.mrb[24].mxu1 %vm89_vm1, %v71_v57 }
  0x3d   :  { %3088 = vmatprep.mubr.msk.f32.mxu0 %vm89_vm1, %v40_v58  ;;  %3136 = vmatprep.mubr.msk.f32.mxu1 %vm89_vm1, %v72_v59 }
  0x40   :  { %3089 = vmatmul.mubr.msk.f32.gmra.mrb[26].mxu0 %vm89_vm1, %v41_v60  ;;  %3137 = vmatmul.mubr.msk.f32.gmra.mrb[26].mxu1 %vm89_vm1, %v73_v61 }
  0x41   :  { %3091 = vmatprep.mubr.msk.f32.mxu0 %vm89_vm1, %v42_v62  ;;  %3139 = vmatprep.mubr.msk.f32.mxu1 %vm89_vm1, %v74_v63 }
  0x44   :  { %3092 = vmatmul.mubr.msk.f32.gmra.mrb[28].mxu0 %vm89_vm1, %v43_v0  ;;  %3140 = vmatmul.mubr.msk.f32.gmra.mrb[28].mxu1 %vm89_vm1, %v75_v1 }
  0x45   :  { %3094 = vmatprep.mubr.msk.f32.mxu0 %vm89_vm1, %v44_v2  ;;  %3142 = vmatprep.mubr.msk.f32.mxu1 %vm89_vm1, %v76_v3 }
  0x48   :  { %3095 = vmatmul.mubr.msk.f32.gmra.mrb[30].mxu0 %vm89_vm1, %v45_v4  ;;  %3143 = vmatmul.mubr.msk.f32.gmra.mrb[30].mxu1 %vm89_vm1, %v77_v5 }
  0xdf   :  { %v3051_v9 = vpop.f32.mrb[0].mxu0  ;;  %v3099_v11 = vpop.f32.mrb[0].mxu1 }
  0xe0   :  { %v352_v12 = vpop.f32.mrb[1].mxu0  ;;  %v512_v13 = vpop.f32.mrb[1].mxu1  ;;  %v358_v16 = vadd.f32 %v3051_v9, %v3455_v10  ;;  %v518_v17 = vadd.f32 %v3099_v11, %v3455_v10 }
  0xe1   :  { %v353_v18 = vadd.f32 %v3455_v10, %v352_v12  ;;  %v513_v19 = vadd.f32 %v3455_v10, %v512_v13 }
  0xe2   :  { %v672_v29 = vmax.f32 %v358_v16, 0.0  ;;  %v704_v30 = vmax.f32 %v518_v17, 0.0 }
  0xe3   :  { %v3054_v20 = vpop.f32.mrb[2].mxu0  ;;  %v3102_v21 = vpop.f32.mrb[2].mxu1  ;;  %v671_v33 = vmax.f32 %v353_v18, 0.0  ;;  %v703_v34 = vmax.f32 %v513_v19, 0.0 }
  0xe4   :  { %v368_v22 = vadd.f32 %v3054_v20, %v3455_v10  ;;  %v528_v23 = vadd.f32 %v3102_v21, %v3455_v10  ;;  %v362_v24 = vpop.f32.mrb[3].mxu0  ;;  %v522_v25 = vpop.f32.mrb[3].mxu1 }
  0xe5   :  { %v363_v27 = vadd.f32 %v3455_v10, %v362_v24  ;;  %v523_v28 = vadd.f32 %v3455_v10, %v522_v25 }
  0xe6   :  { %v674_v31 = vmax.f32 %v368_v22, 0.0  ;;  %v706_v32 = vmax.f32 %v528_v23, 0.0 }
  0xe7   :  { %v673_v35 = vmax.f32 %v363_v27, 0.0  ;;  %v705_v36 = vmax.f32 %v523_v28, 0.0  ;;  %v3057_v37 = vpop.f32.mrb[4].mxu0  ;;  %v3105_v38 = vpop.f32.mrb[4].mxu1 }
  0xe8   :  { %v736_v39 = vmax.f32 %v672_v29, %v674_v31  ;;  %v752_v41 = vmax.f32 %v704_v30, %v706_v32  ;;  %v372_v42 = vpop.f32.mrb[5].mxu0  ;;  %v532_v43 = vpop.f32.mrb[5].mxu1  ;;  %v3472_v46 = vadd.f32 %v3057_v37, %v3455_v10  ;;  %v3475_v47 = vadd.f32 %v3105_v38, %v3455_v10 }
  0xe9   :  { %v735_v44 = vmax.f32 %v671_v33, %v673_v35  ;;  %v3469_v45 = vmax.f32 %v703_v34, %v705_v36  ;;  %v3481_v54 = vadd.f32 %v3455_v10, %v372_v42  ;;  %v3484_v55 = vadd.f32 %v3455_v10, %v532_v43 }
  0xea   :  { %v816_v48 = vcombine.high %v736_v39, %v736_v39  ;;  %v823_v49 = vrot.slane %v736_v39, %v3463_v26  ;;  %v1088_v50 = vcombine.high %v752_v41, %v752_v41  ;;  %v1095_v51 = vrot.slane %v752_v41, %v3463_v26 }
  0xeb   :  { %v799_v52 = vcombine.high %v735_v44, %v735_v44  ;;  %v806_v53 = vrot.slane %v735_v44, %v3463_v26  ;;  %v3486_v56 = vpop.f32.mrb[6].mxu0  ;;  %v3488_v57 = vpop.f32.mrb[6].mxu1  ;;  %v1071_v3 = vcombine.high %v3469_v45, %v3469_v45  ;;  %v1078_v24 = vrot.slane %v3469_v45, %v3463_v26 }
  0xec   :  { %v830_v58 = vrot.slane %v816_v48, %v3463_v26  ;;  %v831_v59 = vcombine.high %v823_v49, %v823_v49  ;;  %v2849_v60 = vrot.slane %v823_v49, 9  ;;  %v1102_v61 = vrot.slane %v1088_v50, %v3463_v26  ;;  %v3492_v62 = vpop.f32.mrb[7].mxu0  ;;  %v3494_v63 = vpop.f32.mrb[7].mxu1 }
  0xed   :  { %v1103_v0 = vcombine.high %v1095_v51, %v1095_v51  ;;  %v2913_v1 = vrot.slane %v1095_v51, 9  ;;  %v813_v2 = vrot.slane %v799_v52, %v3463_v26  ;;  %v814_v18 = vcombine.high %v806_v53, %v806_v53 }
  0xee   :  { %v832_v4 = vcombine.high %v830_v58, %v830_v58  ;;  %v2850_v5 = vrot.slane %v831_v59, 9  ;;  %v2851_v6 = vrot.slane %v830_v58, 9  ;;  %v3499_v7 = vmax.f32 %v823_v49, %v2849_v60 }
  0xef   :  { %v1104_v8 = vcombine.high %v1102_v61, %v1102_v61  ;;  %v2914_v9 = vrot.slane %v1103_v0, 9  ;;  %v2915_v11 = vrot.slane %v1102_v61, 9  ;;  %v3501_v12 = vmax.f32 %v1095_v51, %v2913_v1  ;;  %v3503_v13 = vpop.f32.mrb[8].mxu0  ;;  %v3505_v14 = vpop.f32.mrb[8].mxu1 }
  0xf0   :  { %v2852_v15 = vrot.slane %v832_v4, 9  ;;  %v3507_v16 = vmax.f32 %v831_v59, %v2850_v5  ;;  %v3509_v17 = vmax.f32 %v830_v58, %v2851_v6  ;;  %v3511_v19 = vpop.f32.mrb[9].mxu0  ;;  %v3513_v20 = vpop.f32.mrb[9].mxu1  ;;  %v2130_v27 = vrot.slane %v3499_v7, %v3467_v40 }
  0xf1   :  { %v2916_v21 = vrot.slane %v1104_v8, 9  ;;  %v3515_v22 = vmax.f32 %v1103_v0, %v2914_v9  ;;  %v3517_v23 = vmax.f32 %v1102_v61, %v2915_v11  ;;  %v2386_v28 = vrot.slane %v3501_v12, %v3467_v40 }
  0xf2   :  { %v3521_v25 = vmax.f32 %v832_v4, %v2852_v15  ;;  %v815_v29 = vcombine.high %v813_v2, %v813_v2  ;;  %v2134_v30 = vrot.slane %v3507_v16, %v3467_v40  ;;  %v2138_v31 = vrot.slane %v3509_v17, %v3467_v40 }
  0xf3   :  { %v3531_v32 = vmax.f32 %v1104_v8, %v2916_v21  ;;  %v2845_v33 = vrot.slane %v806_v53, 9  ;;  %v3533_v34 = vpop.f32.mrb[10].mxu0  ;;  %v3535_v35 = vpop.f32.mrb[10].mxu1  ;;  %v2390_v36 = vrot.slane %v3515_v22, %v3467_v40  ;;  %v2846_v37 = vrot.slane %v814_v18, 9 }
  0xf4   :  { %v2847_v38 = vrot.slane %v813_v2, 9  ;;  %v2848_v39 = vrot.slane %v815_v29, 9  ;;  %v3539_v41 = vpop.f32.mrb[11].mxu0  ;;  %v3541_v42 = vpop.f32.mrb[11].mxu1  ;;  %v2394_v43 = vrot.slane %v3517_v23, %v3467_v40  ;;  %v1085_v45 = vrot.slane %v1071_v3, %v3463_v26 }
  0xf5   :  { %v1855_v44 = vmax.f32 %v806_v53, %v2845_v33  ;;  %v1086_v48 = vcombine.high %v1078_v24, %v1078_v24  ;;  %v1856_v49 = vmax.f32 %v814_v18, %v2846_v37  ;;  %v2909_v52 = vrot.slane %v1078_v24, 9 }
  0xf6   :  { %v1857_v50 = vmax.f32 %v813_v2, %v2847_v38  ;;  %v1858_v51 = vmax.f32 %v815_v29, %v2848_v39  ;;  %v1087_v59 = vcombine.high %v1085_v45, %v1085_v45  ;;  %v2911_v61 = vrot.slane %v1085_v45, 9 }
  0xf7   :  { %v2114_v58 = vrot.slane %v1855_v44, %v3467_v40  ;;  %v2910_v60 = vrot.slane %v1086_v48, 9  ;;  %v3547_v0 = vpop.f32.mrb[12].mxu0  ;;  %v3549_v1 = vpop.f32.mrb[12].mxu1  ;;  %v2118_v53 = vrot.slane %v1856_v49, %v3467_v40  ;;  %v1919_v5 = vmax.f32 %v1078_v24, %v2909_v52 }
  0xf8   :  { %v2122_v4 = vrot.slane %v1857_v50, %v3467_v40  ;;  %v2126_v3 = vrot.slane %v1858_v51, %v3467_v40  ;;  %v3554_v2 = vpop.f32.mrb[13].mxu0  ;;  %v3556_v6 = vpop.f32.mrb[13].mxu1  ;;  %v2142_v7 = vrot.slane %v3521_v25, %v3467_v40  ;;  %v2912_v8 = vrot.slane %v1087_v59, 9 }
  0xf9   :  { %v1920_v9 = vmax.f32 %v1086_v48, %v2910_v60  ;;  %v1921_v11 = vmax.f32 %v1085_v45, %v2911_v61  ;;  %v2398_v15 = vrot.slane %v3531_v32, %v3467_v40  ;;  %v2624_v16 = vsel %vm2623_vm4, %v2118_v53, %v2114_v58 }
  0xfa   :  { %v2370_v18 = vrot.slane %v1919_v5, %v3467_v40  ;;  %v676_v21 = vmax.f32 %v3472_v46, 0.0  ;;  %v2626_v24 = vsel %vm2625_vm5, %v2122_v4, %v2624_v16  ;;  %v1922_v29 = vmax.f32 %v1087_v59, %v2912_v8 }
  0xfb   :  { %v2374_v33 = vrot.slane %v1920_v9, %v3467_v40  ;;  %v2378_v37 = vrot.slane %v1921_v11, %v3467_v40  ;;  %v3568_v25 = vpop.f32.mrb[14].mxu0  ;;  %v3570_v38 = vpop.f32.mrb[14].mxu1  ;;  %v2628_v39 = vsel %vm2627_vm6, %v2126_v3, %v2626_v24  ;;  %v708_v32 = vmax.f32 %v3475_v47, 0.0 }
  0xfc   :  { %v388_v44 = vadd.f32 %v3486_v56, %v3455_v10  ;;  %v548_v46 = vadd.f32 %v3488_v57, %v3455_v10  ;;  %v3578_v45 = vpop.f32.mrb[15].mxu0  ;;  %v3580_v48 = vpop.f32.mrb[15].mxu1  ;;  %v2630_v49 = vsel %vm2629_vm7, %v2130_v27, %v2628_v39  ;;  %v2382_v50 = vrot.slane %v1922_v29, %v3467_v40 }
  0xfd   :  { %v2686_v51 = vsel %vm2623_vm4, %v2374_v33, %v2370_v18  ;;  %v383_v52 = vadd.f32 %v3455_v10, %v3492_v62  ;;  %v2632_v47 = vsel %vm2631_vm8, %v2134_v30, %v2630_v49  ;;  %v675_v60 = vmax.f32 %v3481_v54, 0.0 }
  0xfe   :  { %v2687_v56 = vsel %vm2625_vm5, %v2378_v37, %v2686_v51  ;;  %v678_v58 = vmax.f32 %v388_v44, 0.0  ;;  %v710_v59 = vmax.f32 %v548_v46, 0.0  ;;  %v2634_v57 = vsel %vm2633_vm9, %v2138_v31, %v2632_v47 }
  0xff   :  { %v2688_v27 = vsel %vm2627_vm6, %v2382_v50, %v2687_v56  ;;  %v677_v61 = vmax.f32 %v383_v52, 0.0  ;;  %v3595_v53 = vpop.f32.mrb[16].mxu0  ;;  %v3597_v4 = vpop.f32.mrb[16].mxu1  ;;  %v2636_v62 = vsel %vm2635_vm10, %v2142_v7, %v2634_v57  ;;  %v707_v12 = vmax.f32 %v3484_v55, 0.0 }
 0x100   :  { %v2689_v30 = vsel %vm2629_vm7, %v2386_v28, %v2688_v27  ;;  %v738_v3 = vmax.f32 %v676_v21, %v678_v58  ;;  %v754_v17 = vmax.f32 %v708_v32, %v710_v59  ;;  %v3604_v5 = vpop.f32.mrb[17].mxu0  ;;  %v3606_v31 = vpop.f32.mrb[17].mxu1  ;;  %2759 = vst.msk [vmem:[%s4306_s3] sm:$0xff] %vm2758_vm11, %v2636_v62  ;;  %v543_v28 = vadd.f32 %v3455_v10, %v3494_v63 }
 0x101   :  { %v2690_v54 = vsel %vm2631_vm8, %v2390_v36, %v2689_v30  ;;  %v737_v7 = vmax.f32 %v675_v60, %v677_v61 }
 0x102   :  { %v2691_v8 = vsel %vm2633_vm9, %v2394_v43, %v2690_v54  ;;  %v850_v9 = vcombine.high %v738_v3, %v738_v3  ;;  %v857_v11 = vrot.slane %v738_v3, %v3463_v26  ;;  %v1122_v16 = vcombine.high %v754_v17, %v754_v17 }
 0x103   :  { %v2692_v18 = vsel %vm2635_vm10, %v2398_v15, %v2691_v8  ;;  %v1129_v22 = vrot.slane %v754_v17, %v3463_v26  ;;  %v833_v36 = vcombine.high %v737_v7, %v737_v7  ;;  %v840_v21 = vrot.slane %v737_v7, %v3463_v26  ;;  %v3627_v24 = vpop.f32.mrb[18].mxu0  ;;  %v3629_v29 = vpop.f32.mrb[18].mxu1 }
 0x104   :  { %2767 = vst.msk [vmem:[%s4306_s3 + $0x40] sm:$0xff] %vm2758_vm11, %v2692_v18  ;;  %v864_v63 = vrot.slane %v850_v9, %v3463_v26  ;;  %v865_v23 = vcombine.high %v857_v11, %v857_v11  ;;  %v2857_v43 = vrot.slane %v857_v11, 9  ;;  %v1136_v15 = vrot.slane %v1122_v16, %v3463_v26  ;;  %v3637_v33 = vpop.f32.mrb[19].mxu0  ;;  %v3639_v37 = vpop.f32.mrb[19].mxu1 }
 0x105   :  { %v1137_v39 = vcombine.high %v1129_v22, %v1129_v22  ;;  %v2921_v32 = vrot.slane %v1129_v22, 9  ;;  %v847_v44 = vrot.slane %v833_v36, %v3463_v26  ;;  %v709_v46 = vmax.f32 %v543_v28, 0.0 }
 0x106   :  { %v866_v49 = vcombine.high %v864_v63, %v864_v63  ;;  %v2858_v50 = vrot.slane %v865_v23, 9  ;;  %v2859_v51 = vrot.slane %v864_v63, 9  ;;  %v3642_v52 = vmax.f32 %v857_v11, %v2857_v43 }
 0x107   :  { %v1138_v47 = vcombine.high %v1136_v15, %v1136_v15  ;;  %v2922_v56 = vrot.slane %v1137_v39, 9  ;;  %v2923_v58 = vrot.slane %v1136_v15, 9  ;;  %v3644_v59 = vmax.f32 %v1129_v22, %v2921_v32  ;;  %v3646_v57 = vpop.f32.mrb[20].mxu0  ;;  %v3648_v27 = vpop.f32.mrb[20].mxu1 }
 0x108   :  { %v2860_v60 = vrot.slane %v866_v49, 9  ;;  %v3650_v61 = vmax.f32 %v865_v23, %v2858_v50  ;;  %v3652_v62 = vmax.f32 %v864_v63, %v2859_v51  ;;  %v848_v30 = vcombine.high %v840_v21, %v840_v21  ;;  %v3654_v3 = vpop.f32.mrb[21].mxu0  ;;  %v3656_v17 = vpop.f32.mrb[21].mxu1 }
 0x109   :  { %v2924_v54 = vrot.slane %v1138_v47, 9  ;;  %v3658_v7 = vmax.f32 %v1137_v39, %v2922_v56  ;;  %v3660_v28 = vmax.f32 %v1136_v15, %v2923_v58  ;;  %v3664_v8 = vadd.f32 %v3503_v13, %v3455_v10 }
 0x10a   :  { %v3666_v9 = vmax.f32 %v866_v49, %v2860_v60  ;;  %v2162_v11 = vrot.slane %v3642_v52, %v3467_v40  ;;  %v849_v18 = vcombine.high %v847_v44, %v847_v44  ;;  %v2166_v22 = vrot.slane %v3650_v61, %v3467_v40 }
 0x10b   :  { %v2170_v36 = vrot.slane %v3652_v62, %v3467_v40  ;;  %v3676_v63 = vmax.f32 %v1138_v47, %v2924_v54  ;;  %v2853_v23 = vrot.slane %v840_v21, 9  ;;  %v3678_v13 = vpop.f32.mrb[22].mxu0  ;;  %v3680_v43 = vpop.f32.mrb[22].mxu1  ;;  %v2854_v39 = vrot.slane %v848_v30, 9 }
 0x10c   :  { %v2855_v32 = vrot.slane %v847_v44, 9  ;;  %v2856_v49 = vrot.slane %v849_v18, 9  ;;  %v3684_v50 = vpop.f32.mrb[23].mxu0  ;;  %v3686_v51 = vpop.f32.mrb[23].mxu1  ;;  %v2174_v52 = vrot.slane %v3666_v9, %v3467_v40  ;;  %v753_v58 = vmax.f32 %v707_v12, %v709_v46 }
 0x10d   :  { %4307 = vst [vmem:[#allocation2_spill] sm:$0xff] %v3684_v50  ;;  %4308 = vst [vmem:[#allocation3_spill] sm:$0xff] %v3686_v51  ;;  %v1863_v56 = vmax.f32 %v840_v21, %v2853_v23  ;;  %v1864_v60 = vmax.f32 %v848_v30, %v2854_v39  ;;  %v558_v54 = vadd.f32 %v3505_v14, %v3455_v10 }
 0x10e   :  { %v1865_v61 = vmax.f32 %v847_v44, %v2855_v32  ;;  %v1866_v62 = vmax.f32 %v849_v18, %v2856_v49  ;;  %v1105_v51 = vcombine.high %v753_v58, %v753_v58  ;;  %v1112_v9 = vrot.slane %v753_v58, %v3463_v26 }
 0x10f   :  { %v2146_v16 = vrot.slane %v1863_v56, %v3467_v40  ;;  %v3700_v50 = vpop.f32.mrb[24].mxu0  ;;  %v3702_v21 = vpop.f32.mrb[24].mxu1  ;;  %v2150_v55 = vrot.slane %v1864_v60, %v3467_v40  ;;  %v3709_v14 = vadd.f32 %v3455_v10, %v3511_v19  ;;  %v680_v32 = vmax.f32 %v3664_v8, 0.0 }
 0x110   :  { %4309 = vst [vmem:[#allocation4_spill] sm:$0xff] %v3700_v50  ;;  %4310 = vst [vmem:[#allocation5_spill] sm:$0xff] %v3702_v21  ;;  %v2154_v12 = vrot.slane %v1865_v61, %v3467_v40  ;;  %v2158_v44 = vrot.slane %v1866_v62, %v3467_v40  ;;  %v3711_v46 = vpop.f32.mrb[25].mxu0  ;;  %v3713_v30 = vpop.f32.mrb[25].mxu1  ;;  %v1119_v18 = vrot.slane %v1105_v51, %v3463_v26  ;;  %v2917_v39 = vrot.slane %v1112_v9, 9 }
 0x111   :  { %4311 = vst [vmem:[#allocation6_spill] sm:$0xff] %v3711_v46  ;;  %4312 = vst [vmem:[#allocation7_spill] sm:$0xff] %v3713_v30  ;;  %v1120_v23 = vcombine.high %v1112_v9, %v1112_v9  ;;  %v2637_v49 = vsel %vm2623_vm4, %v2150_v55, %v2146_v16  ;;  %v712_v56 = vmax.f32 %v558_v54, 0.0  ;;  %v408_v58 = vadd.f32 %v3533_v34, %v3455_v10 }
 0x112   :  { %v568_v19 = vadd.f32 %v3535_v35, %v3455_v10  ;;  %v2638_v60 = vsel %vm2625_vm5, %v2154_v12, %v2637_v49  ;;  %v1121_v61 = vcombine.high %v1119_v18, %v1119_v18  ;;  %v2919_v15 = vrot.slane %v1119_v18, 9 }
 0x113   :  { %v2918_v62 = vrot.slane %v1120_v23, 9  ;;  %v3723_v47 = vpop.f32.mrb[26].mxu0  ;;  %v3725_v51 = vpop.f32.mrb[26].mxu1  ;;  %v2639_v8 = vsel %vm2627_vm6, %v2158_v44, %v2638_v60  ;;  %v1927_v30 = vmax.f32 %v1112_v9, %v2917_v39  ;;  %v682_v54 = vmax.f32 %v408_v58, 0.0 }
 0x114   :  { %4313 = vst [vmem:[#allocation8_spill] sm:$0xff] %v3723_v47  ;;  %4314 = vst [vmem:[#allocation9_spill] sm:$0xff] %v3725_v51  ;;  %v3729_v55 = vpop.f32.mrb[27].mxu0  ;;  %v3731_v34 = vpop.f32.mrb[27].mxu1  ;;  %v2640_v35 = vsel %vm2629_vm7, %v2162_v11, %v2639_v8  ;;  %v2920_v12 = vrot.slane %v1121_v61, 9  ;;  %v1929_v46 = vmax.f32 %v1119_v18, %v2919_v15  ;;  %v714_v50 = vmax.f32 %v568_v19, 0.0 }
 0x115   :  { %v1928_v49 = vmax.f32 %v1120_v23, %v2918_v62  ;;  %v2641_v21 = vsel %vm2631_vm8, %v2166_v22, %v2640_v35  ;;  %v2402_v47 = vrot.slane %v1927_v30, %v3467_v40  ;;  %v740_v51 = vmax.f32 %v680_v32, %v682_v54 }
 0x116   :  { %v2642_v9 = vsel %vm2633_vm9, %v2170_v36, %v2641_v21  ;;  %v1930_v44 = vmax.f32 %v1121_v61, %v2920_v12  ;;  %v2410_v58 = vrot.slane %v1929_v46, %v3467_v40  ;;  %v756_v18 = vmax.f32 %v712_v56, %v714_v50 }
 0x117   :  { %v2406_v39 = vrot.slane %v1928_v49, %v3467_v40  ;;  %v3739_v60 = vpop.f32.mrb[28].mxu0  ;;  %v3741_v16 = vpop.f32.mrb[28].mxu1  ;;  %v2643_v11 = vsel %vm2635_vm10, %v2174_v52, %v2642_v9  ;;  %v884_v15 = vcombine.high %v740_v51, %v740_v51  ;;  %v891_v22 = vrot.slane %v740_v51, %v3463_v26 }
 0x118   :  { %v3745_v30 = vpop.f32.mrb[29].mxu0  ;;  %v3747_v23 = vpop.f32.mrb[29].mxu1  ;;  %2760 = vst.msk [vmem:[%s4306_s3 + $0x8] sm:$0xff] %vm2758_vm11, %v2643_v11  ;;  %v2414_v36 = vrot.slane %v1930_v44, %v3467_v40  ;;  %v553_v52 = vadd.f32 %v3455_v10, %v3513_v20  ;;  %v403_v46 = vadd.f32 %v3455_v10, %v3539_v41  ;;  %v1156_v62 = vcombine.high %v756_v18, %v756_v18 }
 0x119   :  { %4315 = vst [vmem:[#allocation10_spill] sm:$0xff] %v3745_v30  ;;  %4316 = vst [vmem:[#allocation11_spill] sm:$0xff] %v3747_v23  ;;  %v2693_v21 = vsel %vm2623_vm4, %v2406_v39, %v2402_v47  ;;  %v898_v32 = vrot.slane %v884_v15, %v3463_v26  ;;  %v899_v56 = vcombine.high %v891_v22, %v891_v22  ;;  %v2865_v19 = vrot.slane %v891_v22, 9 }
 0x11a   :  { %v2694_v50 = vsel %vm2625_vm5, %v2410_v58, %v2693_v21  ;;  %v1163_v51 = vrot.slane %v756_v18, %v3463_v26  ;;  %v563_v47 = vadd.f32 %v3455_v10, %v3541_v42  ;;  %v4318_v41 = vrot.slane %v3644_v59, %v3467_v40 }
 0x11b   :  { %v2695_v61 = vsel %vm2627_vm6, %v2414_v36, %v2694_v50  ;;  %v3765_v8 = vpop.f32.mrb[30].mxu0  ;;  %v3767_v20 = vpop.f32.mrb[30].mxu1  ;;  %v900_v35 = vcombine.high %v898_v32, %v898_v32  ;;  %v2866_v12 = vrot.slane %v899_v56, 9  ;;  %v2867_v49 = vrot.slane %v898_v32, 9 }
 0x11c   :  { %4317 = vst [vmem:[#allocation12_spill] sm:$0xff] %v3767_v20  ;;  %v2696_v54 = vsel %vm2629_vm7, %v4318_v41, %v2695_v61  ;;  %v3773_v9 = vpop.f32.mrb[31].mxu0  ;;  %v4320_v44 = vrot.slane %v3658_v7, %v3467_v40  ;;  %v1170_v42 = vrot.slane %v1156_v62, %v3463_v26  ;;  %v1171_v58 = vcombine.high %v1163_v51, %v1163_v51  ;;  %v3788_v50 = vpop.f32.mrb[31].mxu1 }
 0x11d   :  { %4319 = vst [vmem:[#allocation13_spill] sm:$0xff] %v3773_v9  ;;  %v681_v11 = vmax.f32 %v403_v46, 0.0  ;;  %v4321_v15 = vrot.slane %v3660_v28, %v3467_v40  ;;  %v2868_v18 = vrot.slane %v900_v35, 9  ;;  %v3784_v36 = vmax.f32 %v891_v22, %v2865_v19  ;;  %4322 = vst [vmem:[#allocation14_spill] sm:$0xff] %v3788_v50 }
 0x11e   :  { %v2697_v39 = vsel %vm2631_vm8, %v4320_v44, %v2696_v54  ;;  %v3786_v21 = vmax.f32 %v899_v56, %v2866_v12  ;;  %v4323_v7 = vrot.slane %v3676_v63, %v3467_v40  ;;  %v3794_v62 = vmax.f32 %v898_v32, %v2867_v49 }
 0x11f   :  { %v2698_v59 = vsel %vm2633_vm9, %v4321_v15, %v2697_v39  ;;  %v1172_v46 = vcombine.high %v1170_v42, %v1170_v42  ;;  %v2929_v41 = vrot.slane %v1163_v51, 9  ;;  %v711_v28 = vmax.f32 %v553_v52, 0.0 }
 0x120   :  { %v2699_v61 = vsel %vm2635_vm10, %v4323_v7, %v2698_v59  ;;  %v3800_v22 = vmax.f32 %v900_v35, %v2868_v18  ;;  %v2930_v56 = vrot.slane %v1171_v58, 9  ;;  %v2931_v19 = vrot.slane %v1170_v42, 9 }
 0x121   :  { %2768 = vst.msk [vmem:[%s4306_s3 + $0x48] sm:$0xff] %vm2758_vm11, %v2699_v61  ;;  %v2932_v54 = vrot.slane %v1172_v46, 9  ;;  %v3802_v12 = vmax.f32 %v1163_v51, %v2929_v41  ;;  %v4324_v63 = vmax.f32 %v3709_v14, 0.0  ;;  %v2194_v32 = vrot.slane %v3784_v36, %v3467_v40 }
 0x122   :  { %v3810_v39 = vmax.f32 %v1171_v58, %v2930_v56  ;;  %v713_v15 = vmax.f32 %v563_v47, 0.0  ;;  %v3814_v35 = vmax.f32 %v1170_v42, %v2931_v19  ;;  %v418_v51 = vadd.f32 %v3547_v0, %v3455_v10 }
 0x123   :  { %v739_v44 = vmax.f32 %v4324_v63, %v681_v11  ;;  %v3820_v11 = vmax.f32 %v1172_v46, %v2932_v54  ;;  %v2450_v47 = vrot.slane %v3802_v12, %v3467_v40  ;;  %v578_v7 = vadd.f32 %v3549_v1, %v3455_v10 }
 0x124   :  { %v755_v36 = vmax.f32 %v711_v28, %v713_v15  ;;  %v2454_v58 = vrot.slane %v3810_v39, %v3467_v40  ;;  %v2458_v56 = vrot.slane %v3814_v35, %v3467_v40  ;;  %v684_v54 = vmax.f32 %v418_v51, 0.0 }
 0x125   :  { %v867_v59 = vcombine.high %v739_v44, %v739_v44  ;;  %v874_v18 = vrot.slane %v739_v44, %v3463_v26  ;;  %v2462_v15 = vrot.slane %v3820_v11, %v3467_v40  ;;  %v716_v50 = vmax.f32 %v578_v7, 0.0 }
 0x126   :  { %v1139_v41 = vcombine.high %v755_v36, %v755_v36  ;;  %v1146_v46 = vrot.slane %v755_v36, %v3463_v26  ;;  %v428_v7 = vadd.f32 %v3568_v25, %v3455_v10 }
 0x127   :  { %v881_v42 = vrot.slane %v867_v59, %v3463_v26  ;;  %v882_v0 = vcombine.high %v874_v18, %v874_v18  ;;  %v2861_v61 = vrot.slane %v874_v18, 9 }
 0x128   :  { %v1153_v44 = vrot.slane %v1139_v41, %v3463_v26  ;;  %v1154_v39 = vcombine.high %v1146_v46, %v1146_v46  ;;  %v2925_v14 = vrot.slane %v1146_v46, 9 }
 0x129   :  { %v883_v28 = vcombine.high %v881_v42, %v881_v42  ;;  %v2863_v19 = vrot.slane %v881_v42, 9  ;;  %v2862_v12 = vrot.slane %v882_v0, 9  ;;  %v1871_v63 = vmax.f32 %v874_v18, %v2861_v61 }
 0x12a   :  { %v1155_v49 = vcombine.high %v1153_v44, %v1153_v44  ;;  %v2926_v36 = vrot.slane %v1154_v39, 9  ;;  %v2927_v23 = vrot.slane %v1153_v44, 9  ;;  %v1935_v51 = vmax.f32 %v1146_v46, %v2925_v14 }
 0x12b   :  { %v2864_v1 = vrot.slane %v883_v28, 9  ;;  %v1873_v59 = vmax.f32 %v881_v42, %v2863_v19  ;;  %v1872_v52 = vmax.f32 %v882_v0, %v2862_v12  ;;  %v2178_v18 = vrot.slane %v1871_v63, %v3467_v40 }
 0x12c   :  { %v2928_v41 = vrot.slane %v1155_v49, 9  ;;  %v1936_v30 = vmax.f32 %v1154_v39, %v2926_v36  ;;  %v1937_v20 = vmax.f32 %v1153_v44, %v2927_v23  ;;  %v413_v42 = vadd.f32 %v3455_v10, %v3554_v2 }
 0x12d   :  { %v1874_v9 = vmax.f32 %v883_v28, %v2864_v1  ;;  %v2186_v35 = vrot.slane %v1873_v59, %v3467_v40  ;;  %v2182_v61 = vrot.slane %v1872_v52, %v3467_v40  ;;  %v2434_v14 = vrot.slane %v1935_v51, %v3467_v40 }
 0x12e   :  { %v1938_v28 = vmax.f32 %v1155_v49, %v2928_v41  ;;  %v2438_v46 = vrot.slane %v1936_v30, %v3467_v40  ;;  %v2442_v19 = vrot.slane %v1937_v20, %v3467_v40  ;;  %v686_v12 = vmax.f32 %v428_v7, 0.0 }
 0x12f   :  { %v2190_v11 = vrot.slane %v1874_v9, %v3467_v40  ;;  %v2644_v0 = vsel %vm2623_vm4, %v2182_v61, %v2178_v18  ;;  %v588_v23 = vadd.f32 %v3570_v38, %v3455_v10  ;;  %v423_v49 = vadd.f32 %v3455_v10, %v3578_v45 }
 0x130   :  { %v2645_v52 = vsel %vm2625_vm5, %v2186_v35, %v2644_v0  ;;  %v2446_v9 = vrot.slane %v1938_v28, %v3467_v40  ;;  %v2700_v25 = vsel %vm2623_vm4, %v2438_v46, %v2434_v14  ;;  %v742_v44 = vmax.f32 %v684_v54, %v686_v12 }
 0x131   :  { %v2646_v2 = vsel %vm2627_vm6, %v2190_v11, %v2645_v52  ;;  %v2701_v30 = vsel %vm2625_vm5, %v2442_v19, %v2700_v25  ;;  %v718_v39 = vmax.f32 %v588_v23, 0.0  ;;  %v4325_v20 = vrot.slane %v3786_v21, %v3467_v40 }
 0x132   :  { %v2647_v63 = vsel %vm2629_vm7, %v2194_v32, %v2646_v2  ;;  %v2702_v1 = vsel %vm2627_vm6, %v2446_v9, %v2701_v30  ;;  %v683_v59 = vmax.f32 %v413_v42, 0.0  ;;  %v685_v36 = vmax.f32 %v423_v49, 0.0 }
 0x133   :  { %v2648_v38 = vsel %vm2631_vm8, %v4325_v20, %v2647_v63  ;;  %v4326_v35 = vrot.slane %v3794_v62, %v3467_v40  ;;  %v2703_v32 = vsel %vm2629_vm7, %v2450_v47, %v2702_v1  ;;  %v918_v51 = vcombine.high %v742_v44, %v742_v44 }
 0x134   :  { %v925_v54 = vrot.slane %v742_v44, %v3463_v26  ;;  %v4327_v18 = vrot.slane %v3800_v22, %v3467_v40  ;;  %v2704_v61 = vsel %vm2631_vm8, %v2454_v58, %v2703_v32  ;;  %v758_v41 = vmax.f32 %v716_v50, %v718_v39 }
 0x135   :  { %v2649_v45 = vsel %vm2633_vm9, %v4326_v35, %v2648_v38  ;;  %v741_v11 = vmax.f32 %v683_v59, %v685_v36  ;;  %v2705_v62 = vsel %vm2633_vm9, %v2458_v56, %v2704_v61  ;;  %v932_v47 = vrot.slane %v918_v51, %v3463_v26 }
 0x136   :  { %v2650_v21 = vsel %vm2635_vm10, %v4327_v18, %v2649_v45  ;;  %v933_v42 = vcombine.high %v925_v54, %v925_v54  ;;  %v2873_v7 = vrot.slane %v925_v54, 9  ;;  %v2706_v0 = vsel %vm2635_vm10, %v2462_v15, %v2705_v62 }
 0x137   :  { %2761 = vst.msk [vmem:[%s4306_s3 + $0x10] sm:$0xff] %vm2758_vm11, %v2650_v21  ;;  %v573_v22 = vadd.f32 %v3455_v10, %v3556_v6  ;;  %v1190_v28 = vcombine.high %v758_v41, %v758_v41  ;;  %v1197_v50 = vrot.slane %v758_v41, %v3463_v26  ;;  %2769 = vst.msk [vmem:[%s4306_s3 + $0x50] sm:$0xff] %vm2758_vm11, %v2706_v0  ;;  %v2875_v56 = vrot.slane %v932_v47, 9 }
 0x138   :  { %v934_v58 = vcombine.high %v932_v47, %v932_v47  ;;  %v2874_v14 = vrot.slane %v933_v42, 9  ;;  %v901_v46 = vcombine.high %v741_v11, %v741_v11  ;;  %v3888_v52 = vmax.f32 %v925_v54, %v2873_v7 }
 0x139   :  { %v1204_v19 = vrot.slane %v1190_v28, %v3463_v26  ;;  %v1205_v15 = vcombine.high %v1197_v50, %v1197_v50  ;;  %v2937_v12 = vrot.slane %v1197_v50, 9  ;;  %v908_v2 = vrot.slane %v741_v11, %v3463_v26 }
 0x13a   :  { %v2876_v23 = vrot.slane %v934_v58, 9  ;;  %v1884_v6 = vmax.f32 %v933_v42, %v2874_v14  ;;  %v3892_v9 = vmax.f32 %v932_v47, %v2875_v56  ;;  %v715_v63 = vmax.f32 %v573_v22, 0.0 }
 0x13b   :  { %v1206_v25 = vcombine.high %v1204_v19, %v1204_v19  ;;  %v2938_v49 = vrot.slane %v1205_v15, 9  ;;  %v915_v30 = vrot.slane %v901_v46, %v3463_v26  ;;  %v583_v44 = vadd.f32 %v3455_v10, %v3580_v48 }
 0x13c   :  { %v1886_v39 = vmax.f32 %v934_v58, %v2876_v23  ;;  %v2226_v20 = vrot.slane %v3888_v52, %v3467_v40  ;;  %v2939_v38 = vrot.slane %v1204_v19, 9  ;;  %v3899_v1 = vmax.f32 %v1197_v50, %v2937_v12 }
 0x13d   :  { %v2230_v59 = vrot.slane %v1884_v6, %v3467_v40  ;;  %v916_v36 = vcombine.high %v908_v2, %v908_v2  ;;  %v917_v35 = vcombine.high %v915_v30, %v915_v30  ;;  %v2869_v45 = vrot.slane %v908_v2, 9 }
 0x13e   :  { %v2234_v32 = vrot.slane %v3892_v9, %v3467_v40  ;;  %v2940_v51 = vrot.slane %v1206_v25, 9  ;;  %v3904_v54 = vmax.f32 %v1205_v15, %v2938_v49  ;;  %v2871_v18 = vrot.slane %v915_v30, 9 }
 0x13f   :  { %v2870_v48 = vrot.slane %v916_v36, 9  ;;  %v2872_v21 = vrot.slane %v917_v35, 9  ;;  %v1879_v61 = vmax.f32 %v908_v2, %v2869_v45  ;;  %v717_v41 = vmax.f32 %v583_v44, 0.0 }
 0x140   :  { %v3906_v11 = vmax.f32 %v1204_v19, %v2939_v38  ;;  %v2482_v62 = vrot.slane %v3899_v1, %v3467_v40  ;;  %v1881_v47 = vmax.f32 %v915_v30, %v2871_v18  ;;  %v438_v42 = vadd.f32 %v3595_v53, %v3455_v10 }
 0x141   :  { %v2238_v7 = vrot.slane %v1886_v39, %v3467_v40  ;;  %v1880_v0 = vmax.f32 %v916_v36, %v2870_v48  ;;  %v1882_v22 = vmax.f32 %v917_v35, %v2872_v21  ;;  %v757_v28 = vmax.f32 %v715_v63, %v717_v41 }
 0x142   :  { %v3913_v50 = vmax.f32 %v1206_v25, %v2940_v51  ;;  %v2210_v58 = vrot.slane %v1879_v61, %v3467_v40  ;;  %v2218_v14 = vrot.slane %v1881_v47, %v3467_v40  ;;  %v598_v56 = vadd.f32 %v3597_v4, %v3455_v10 }
 0x143   :  { %v2214_v46 = vrot.slane %v1880_v0, %v3467_v40  ;;  %v2222_v52 = vrot.slane %v1882_v22, %v3467_v40  ;;  %v1173_v19 = vcombine.high %v757_v28, %v757_v28  ;;  %v1180_v53 = vrot.slane %v757_v28, %v3463_v26 }
 0x144   :  { %v2486_v15 = vrot.slane %v3904_v54, %v3467_v40  ;;  %v688_v12 = vmax.f32 %v438_v42, 0.0  ;;  %v448_v23 = vadd.f32 %v3627_v24, %v3455_v10  ;;  %v608_v6 = vadd.f32 %v3629_v29, %v3455_v10 }
 0x145   :  { %v2651_v2 = vsel %vm2623_vm4, %v2214_v46, %v2210_v58  ;;  %v1187_v4 = vrot.slane %v1173_v19, %v3463_v26  ;;  %v1188_v9 = vcombine.high %v1180_v53, %v1180_v53  ;;  %v2933_v25 = vrot.slane %v1180_v53, 9 }
 0x146   :  { %v2652_v49 = vsel %vm2625_vm5, %v2218_v14, %v2651_v2  ;;  %v720_v63 = vmax.f32 %v598_v56, 0.0  ;;  %v690_v30 = vmax.f32 %v448_v23, 0.0  ;;  %v722_v44 = vmax.f32 %v608_v6, 0.0 }
 0x147   :  { %v2653_v39 = vsel %vm2627_vm6, %v2222_v52, %v2652_v49  ;;  %v1189_v38 = vcombine.high %v1187_v4, %v1187_v4  ;;  %v2934_v36 = vrot.slane %v1188_v9, 9  ;;  %v2935_v35 = vrot.slane %v1187_v4, 9  ;;  %v3964_v49 = vld [vmem:[%s4305_s2] ss:$0 sm:$0xff] }
 0x148   :  { %v2654_v24 = vsel %vm2629_vm7, %v2226_v20, %v2653_v39  ;;  %v1943_v45 = vmax.f32 %v1180_v53, %v2933_v25  ;;  %v744_v29 = vmax.f32 %v688_v12, %v690_v30  ;;  %v760_v51 = vmax.f32 %v720_v63, %v722_v44 }
 0x149   :  { %v2655_v54 = vsel %vm2631_vm8, %v2230_v59, %v2654_v24  ;;  %v2936_v18 = vrot.slane %v1189_v38, 9  ;;  %v1944_v48 = vmax.f32 %v1188_v9, %v2934_v36  ;;  %v1945_v21 = vmax.f32 %v1187_v4, %v2935_v35 }
 0x14a   :  { %v2656_v61 = vsel %vm2633_vm9, %v2234_v32, %v2655_v54  ;;  %v2466_v41 = vrot.slane %v1943_v45, %v3467_v40  ;;  %v952_v47 = vcombine.high %v744_v29, %v744_v29  ;;  %v959_v42 = vrot.slane %v744_v29, %v3463_v26 }
 0x14b   :  { %v2657_v0 = vsel %vm2635_vm10, %v2238_v7, %v2656_v61  ;;  %v1946_v22 = vmax.f32 %v1189_v38, %v2936_v18  ;;  %v2470_v20 = vrot.slane %v1944_v48, %v3467_v40  ;;  %v2474_v28 = vrot.slane %v1945_v21, %v3467_v40 }
 0x14c   :  { %v2490_v59 = vrot.slane %v3906_v11, %v3467_v40  ;;  %2762 = vst.msk [vmem:[%s4306_s3 + $0x18] sm:$0xff] %vm2758_vm11, %v2657_v0  ;;  %v966_v32 = vrot.slane %v952_v47, %v3463_v26  ;;  %v967_v58 = vcombine.high %v959_v42, %v959_v42  ;;  %v1224_v14 = vcombine.high %v760_v51, %v760_v51 }
 0x14d   :  { %v2494_v7 = vrot.slane %v3913_v50, %v3467_v40  ;;  %v2478_v56 = vrot.slane %v1946_v22, %v3467_v40  ;;  %v2707_v46 = vsel %vm2623_vm4, %v2470_v20, %v2466_v41  ;;  %v1231_v52 = vrot.slane %v760_v51, %v3463_v26 }
 0x14e   :  { %v2708_v11 = vsel %vm2625_vm5, %v2474_v28, %v2707_v46  ;;  %v968_v19 = vcombine.high %v966_v32, %v966_v32  ;;  %v2881_v53 = vrot.slane %v959_v42, 9  ;;  %v2882_v12 = vrot.slane %v967_v58, 9 }
 0x14f   :  { %v2709_v23 = vsel %vm2627_vm6, %v2478_v56, %v2708_v11  ;;  %v2883_v6 = vrot.slane %v966_v32, 9  ;;  %v1238_v2 = vrot.slane %v1224_v14, %v3463_v26  ;;  %v1239_v4 = vcombine.high %v1231_v52, %v1231_v52 }
 0x150   :  { %v2710_v50 = vsel %vm2629_vm7, %v2482_v62, %v2709_v23  ;;  %v433_v9 = vadd.f32 %v3455_v10, %v3604_v5  ;;  %v2884_v25 = vrot.slane %v968_v19, 9  ;;  %v443_v63 = vadd.f32 %v3964_v49, %v3637_v33 }
 0x151   :  { %v2711_v30 = vsel %vm2631_vm8, %v2486_v15, %v2710_v50  ;;  %v593_v44 = vadd.f32 %v3964_v49, %v3606_v31  ;;  %v1240_v1 = vcombine.high %v1238_v2, %v1238_v2  ;;  %v2945_v39 = vrot.slane %v1231_v52, 9 }
 0x152   :  { %v2712_v62 = vsel %vm2633_vm9, %v2490_v59, %v2711_v30  ;;  %v3972_v38 = vmax.f32 %v959_v42, %v2881_v53  ;;  %v3974_v10 = vmax.f32 %v967_v58, %v2882_v12  ;;  %v3977_v36 = vmax.f32 %v966_v32, %v2883_v6 }
 0x153   :  { %v2713_v5 = vsel %vm2635_vm10, %v2494_v7, %v2712_v62  ;;  %v3979_v35 = vmax.f32 %v968_v19, %v2884_v25  ;;  %v2946_v33 = vrot.slane %v1239_v4, 9  ;;  %v687_v31 = vmax.f32 %v433_v9, 0.0 }
 0x154   :  { %2770 = vst.msk [vmem:[%s4306_s3 + $0x58] sm:$0xff] %vm2758_vm11, %v2713_v5  ;;  %v2947_v15 = vrot.slane %v1238_v2, 9  ;;  %v689_v24 = vmax.f32 %v443_v63, 0.0  ;;  %v603_v45 = vadd.f32 %v3964_v49, %v3639_v37  ;;  %v719_v29 = vmax.f32 %v593_v44, 0.0 }
 0x155   :  { %v2948_v51 = vrot.slane %v1240_v1, 9  ;;  %v3987_v54 = vmax.f32 %v1231_v52, %v2945_v39  ;;  %v2258_v18 = vrot.slane %v3972_v38, %v3467_v40  ;;  %v2262_v48 = vrot.slane %v3974_v10, %v3467_v40 }
 0x156   :  { %v743_v21 = vmax.f32 %v687_v31, %v689_v24  ;;  %v721_v61 = vmax.f32 %v603_v45, 0.0  ;;  %v2266_v41 = vrot.slane %v3977_v36, %v3467_v40  ;;  %v2270_v47 = vrot.slane %v3979_v35, %v3467_v40 }
 0x157   :  { %v3997_v42 = vmax.f32 %v1239_v4, %v2946_v33  ;;  %v458_v37 = vadd.f32 %v3964_v49, %v3646_v57  ;;  %v4001_v0 = vmax.f32 %v1238_v2, %v2947_v15  ;;  %v4004_v59 = vmax.f32 %v1240_v1, %v2948_v51 }
 0x158   :  { %v935_v22 = vcombine.high %v743_v21, %v743_v21  ;;  %v942_v20 = vrot.slane %v743_v21, %v3463_v26  ;;  %v759_v28 = vmax.f32 %v719_v29, %v721_v61  ;;  %v2514_v32 = vrot.slane %v3987_v54, %v3467_v40 }
 0x159   :  { %v4010_v58 = vadd.f32 %v3964_v49, %v3648_v27  ;;  %v468_v14 = vadd.f32 %v3964_v49, %v3678_v13  ;;  %v2518_v52 = vrot.slane %v3997_v42, %v3467_v40  ;;  %v692_v19 = vmax.f32 %v458_v37, 0.0 }
 0x15a   :  { %v949_v57 = vrot.slane %v935_v22, %v3463_v26  ;;  %v950_v7 = vcombine.high %v942_v20, %v942_v20  ;;  %v2877_v56 = vrot.slane %v942_v20, 9  ;;  %v1207_v46 = vcombine.high %v759_v28, %v759_v28 }
 0x15b   :  { %v1214_v11 = vrot.slane %v759_v28, %v3463_v26  ;;  %v694_v53 = vmax.f32 %v468_v14, 0.0  ;;  %v2522_v28 = vrot.slane %v4001_v0, %v3467_v40  ;;  %v2526_v36 = vrot.slane %v4004_v59, %v3467_v40 }
 0x15c   :  { %v951_v12 = vcombine.high %v949_v57, %v949_v57  ;;  %v2878_v23 = vrot.slane %v950_v7, 9  ;;  %v2879_v6 = vrot.slane %v949_v57, 9  ;;  %v1887_v27 = vmax.f32 %v942_v20, %v2877_v56 }
 0x15d   :  { %v1221_v2 = vrot.slane %v1207_v46, %v3463_v26  ;;  %v1222_v4 = vcombine.high %v1214_v11, %v1214_v11  ;;  %v2941_v13 = vrot.slane %v1214_v11, 9  ;;  %v746_v50 = vmax.f32 %v692_v19, %v694_v53 }
 0x15e   :  { %v2880_v9 = vrot.slane %v951_v12, 9  ;;  %v1888_v25 = vmax.f32 %v950_v7, %v2878_v23  ;;  %v1889_v63 = vmax.f32 %v949_v57, %v2879_v6  ;;  %v2242_v30 = vrot.slane %v1887_v27, %v3467_v40 }
 0x15f   :  { %v1223_v44 = vcombine.high %v1221_v2, %v1221_v2  ;;  %v2942_v1 = vrot.slane %v1222_v4, 9  ;;  %v2943_v39 = vrot.slane %v1221_v2, 9  ;;  %v1951_v62 = vmax.f32 %v1214_v11, %v2941_v13  ;;  %v4328_v13 = vld [vmem:[#allocation2_spill] sm:$0xff] }
 0x160   :  { %v1890_v38 = vmax.f32 %v951_v12, %v2880_v9  ;;  %v2246_v5 = vrot.slane %v1888_v25, %v3467_v40  ;;  %v2250_v33 = vrot.slane %v1889_v63, %v3467_v40  ;;  %v986_v31 = vcombine.high %v746_v50, %v746_v50  ;;  %v4329_v63 = vld [vmem:[#allocation3_spill] sm:$0xff] }
 0x161   :  { %v2944_v15 = vrot.slane %v1223_v44, 9  ;;  %v1952_v24 = vmax.f32 %v1222_v4, %v2942_v1  ;;  %v1953_v45 = vmax.f32 %v1221_v2, %v2943_v39  ;;  %v2498_v29 = vrot.slane %v1951_v62, %v3467_v40 }
 0x162   :  { %v2254_v51 = vrot.slane %v1890_v38, %v3467_v40  ;;  %v2658_v54 = vsel %vm2623_vm4, %v2246_v5, %v2242_v30  ;;  %v993_v21 = vrot.slane %v746_v50, %v3463_v26  ;;  %v1000_v61 = vrot.slane %v986_v31, %v3463_v26  ;;  %v4330_v5 = vld [vmem:[#allocation4_spill] sm:$0xff] }
 0x163   :  { %v2659_v42 = vsel %vm2625_vm5, %v2250_v33, %v2658_v54  ;;  %v1954_v37 = vmax.f32 %v1223_v44, %v2944_v15  ;;  %v2502_v22 = vrot.slane %v1952_v24, %v3467_v40  ;;  %v2506_v20 = vrot.slane %v1953_v45, %v3467_v40  ;;  %v4331_v54 = vld [vmem:[#allocation5_spill] sm:$0xff] }
 0x164   :  { %v2660_v14 = vsel %vm2627_vm6, %v2254_v51, %v2659_v42  ;;  %v1001_v57 = vcombine.high %v993_v21, %v993_v21  ;;  %v1002_v7 = vcombine.high %v1000_v61, %v1000_v61  ;;  %v628_v19 = vadd.f32 %v3964_v49, %v3680_v43 }
 0x165   :  { %v2661_v56 = vsel %vm2629_vm7, %v2258_v18, %v2660_v14  ;;  %v2510_v46 = vrot.slane %v1954_v37, %v3467_v40  ;;  %v2714_v11 = vsel %vm2623_vm4, %v2502_v22, %v2498_v29  ;;  %v2889_v12 = vrot.slane %v993_v21, 9 }
 0x166   :  { %v2662_v53 = vsel %vm2631_vm8, %v2262_v48, %v2661_v56  ;;  %v2715_v0 = vsel %vm2625_vm5, %v2506_v20, %v2714_v11  ;;  %v2891_v23 = vrot.slane %v1000_v61, 9  ;;  %v453_v27 = vadd.f32 %v3964_v49, %v3654_v3 }
 0x167   :  { %v2663_v18 = vsel %vm2633_vm9, %v2266_v41, %v2662_v53  ;;  %v2716_v6 = vsel %vm2627_vm6, %v2510_v46, %v2715_v0  ;;  %v613_v43 = vadd.f32 %v3964_v49, %v3656_v17  ;;  %v2890_v2 = vrot.slane %v1001_v57, 9  ;;  %v4332_v0 = vld [vmem:[#allocation8_spill] sm:$0xff] }
 0x168   :  { %v2664_v10 = vsel %vm2635_vm10, %v2270_v47, %v2663_v18  ;;  %v2717_v48 = vsel %vm2629_vm7, %v2514_v32, %v2716_v6  ;;  %v2892_v4 = vrot.slane %v1002_v7, 9  ;;  %v724_v17 = vmax.f32 %v4010_v58, 0.0 }
 0x169   :  { %2763 = vst.msk [vmem:[%s4306_s3 + $0x20] sm:$0xff] %vm2758_vm11, %v2664_v10  ;;  %v2718_v3 = vsel %vm2631_vm8, %v2518_v52, %v2717_v48  ;;  %v726_v41 = vmax.f32 %v628_v19, 0.0  ;;  %v4066_v47 = vmax.f32 %v993_v21, %v2889_v12  ;;  %v4068_v32 = vmax.f32 %v1000_v61, %v2891_v23  ;;  %v4333_v23 = vld [vmem:[#allocation9_spill] sm:$0xff] }
 0x16a   :  { %v2719_v35 = vsel %vm2633_vm9, %v2522_v28, %v2718_v3  ;;  %v463_v50 = vadd.f32 %v3964_v49, %v4328_v13  ;;  %v691_v9 = vmax.f32 %v453_v27, 0.0  ;;  %v623_v30 = vadd.f32 %v3964_v49, %v4329_v63 }
 0x16b   :  { %v2720_v59 = vsel %vm2635_vm10, %v2526_v36, %v2719_v35  ;;  %v762_v25 = vmax.f32 %v724_v17, %v726_v41  ;;  %v723_v58 = vmax.f32 %v613_v43, 0.0  ;;  %v4079_v52 = vmax.f32 %v1001_v57, %v2890_v2 }
 0x16c   :  { %2771 = vst.msk [vmem:[%s4306_s3 + $0x60] sm:$0xff] %vm2758_vm11, %v2720_v59  ;;  %v4081_v44 = vmax.f32 %v1002_v7, %v2892_v4  ;;  %v693_v1 = vmax.f32 %v463_v50, 0.0  ;;  %v725_v38 = vmax.f32 %v623_v30, 0.0  ;;  %v478_v33 = vadd.f32 %v3964_v49, %v4330_v5 }
 0x16d   :  { %v1258_v39 = vcombine.high %v762_v25, %v762_v25  ;;  %v1265_v62 = vrot.slane %v762_v25, %v3463_v26  ;;  %v2290_v31 = vrot.slane %v4066_v47, %v3467_v40  ;;  %v2298_v15 = vrot.slane %v4068_v32, %v3467_v40 }
 0x16e   :  { %v745_v24 = vmax.f32 %v691_v9, %v693_v1  ;;  %v761_v51 = vmax.f32 %v723_v58, %v725_v38  ;;  %v4093_v21 = vadd.f32 %v3964_v49, %v4331_v54  ;;  %v2294_v61 = vrot.slane %v4079_v52, %v3467_v40 }
 0x16f   :  { %v1272_v45 = vrot.slane %v1258_v39, %v3463_v26  ;;  %v1273_v29 = vcombine.high %v1265_v62, %v1265_v62  ;;  %v2302_v42 = vrot.slane %v4081_v44, %v3467_v40  ;;  %v2953_v28 = vrot.slane %v1265_v62, 9 }
 0x170   :  { %v969_v37 = vcombine.high %v745_v24, %v745_v24  ;;  %v976_v22 = vrot.slane %v745_v24, %v3463_v26  ;;  %v696_v57 = vmax.f32 %v478_v33, 0.0  ;;  %v1241_v19 = vcombine.high %v761_v51, %v761_v51 }
 0x171   :  { %v1274_v20 = vcombine.high %v1272_v45, %v1272_v45  ;;  %v2954_v14 = vrot.slane %v1273_v29, 9  ;;  %v2955_v7 = vrot.slane %v1272_v45, 9  ;;  %v728_v53 = vmax.f32 %v4093_v21, 0.0 }
 0x172   :  { %v983_v56 = vrot.slane %v969_v37, %v3463_v26  ;;  %v984_v46 = vcombine.high %v976_v22, %v976_v22  ;;  %v2885_v11 = vrot.slane %v976_v22, 9  ;;  %v488_v12 = vadd.f32 %v3964_v49, %v4332_v0 }
 0x173   :  { %v648_v18 = vadd.f32 %v3964_v49, %v4333_v23  ;;  %v2956_v48 = vrot.slane %v1274_v20, 9  ;;  %v1963_v2 = vmax.f32 %v1265_v62, %v2953_v28  ;;  %v1964_v4 = vmax.f32 %v1273_v29, %v2954_v14 }
 0x174   :  { %v985_v6 = vcombine.high %v983_v56, %v983_v56  ;;  %v2886_v27 = vrot.slane %v984_v46, 9  ;;  %v2887_v43 = vrot.slane %v983_v56, 9  ;;  %v1895_v10 = vmax.f32 %v976_v22, %v2885_v11 }
 0x175   :  { %v1248_v36 = vrot.slane %v761_v51, %v3463_v26  ;;  %v1965_v3 = vmax.f32 %v1272_v45, %v2955_v7  ;;  %v1255_v13 = vrot.slane %v1241_v19, %v3463_v26  ;;  %v698_v30 = vmax.f32 %v488_v12, 0.0 }
 0x176   :  { %v2888_v17 = vrot.slane %v985_v6, 9  ;;  %v1896_v41 = vmax.f32 %v984_v46, %v2886_v27  ;;  %v1897_v35 = vmax.f32 %v983_v56, %v2887_v43  ;;  %v2274_v47 = vrot.slane %v1895_v10, %v3467_v40 }
 0x177   :  { %v1256_v50 = vcombine.high %v1248_v36, %v1248_v36  ;;  %v2949_v59 = vrot.slane %v1248_v36, 9  ;;  %v1257_v58 = vcombine.high %v1255_v13, %v1255_v13  ;;  %v2951_v1 = vrot.slane %v1255_v13, 9 }
 0x178   :  { %v1898_v9 = vmax.f32 %v985_v6, %v2888_v17  ;;  %v2278_v25 = vrot.slane %v1896_v41, %v3467_v40  ;;  %v2282_v63 = vrot.slane %v1897_v35, %v3467_v40  ;;  %v748_v5 = vmax.f32 %v696_v57, %v698_v30  ;;  %v4335_v41 = vld [vmem:[#allocation7_spill] sm:$0xff] }
 0x179   :  { %v2950_v52 = vrot.slane %v1256_v50, 9  ;;  %v1959_v39 = vmax.f32 %v1248_v36, %v2949_v59  ;;  %v730_v33 = vmax.f32 %v648_v18, 0.0  ;;  %v2952_v45 = vrot.slane %v1257_v58, 9 }
 0x17a   :  { %v2286_v62 = vrot.slane %v1898_v9, %v3467_v40  ;;  %v2665_v38 = vsel %vm2623_vm4, %v2278_v25, %v2274_v47  ;;  %v1961_v51 = vmax.f32 %v1255_v13, %v2951_v1  ;;  %v1020_v37 = vcombine.high %v748_v5, %v748_v5 }
 0x17b   :  { %v2666_v24 = vsel %vm2625_vm5, %v2282_v63, %v2665_v38  ;;  %v1960_v29 = vmax.f32 %v1256_v50, %v2950_v52  ;;  %v2530_v21 = vrot.slane %v1959_v39, %v3467_v40  ;;  %v1027_v22 = vrot.slane %v748_v5, %v3463_v26 }
 0x17c   :  { %v2667_v54 = vsel %vm2627_vm6, %v2286_v62, %v2666_v24  ;;  %v1962_v14 = vmax.f32 %v1257_v58, %v2952_v45  ;;  %v2538_v57 = vrot.slane %v1961_v51, %v3467_v40  ;;  %v1966_v56 = vmax.f32 %v1274_v20, %v2956_v48 }
 0x17d   :  { %v2668_v28 = vsel %vm2629_vm7, %v2290_v31, %v2667_v54  ;;  %v2534_v7 = vrot.slane %v1960_v29, %v3467_v40  ;;  %v1034_v11 = vrot.slane %v1020_v37, %v3463_v26  ;;  %v1035_v19 = vcombine.high %v1027_v22, %v1027_v22 }
 0x17e   :  { %v2669_v46 = vsel %vm2631_vm8, %v2294_v61, %v2668_v28  ;;  %v2542_v12 = vrot.slane %v1962_v14, %v3467_v40  ;;  %v764_v23 = vmax.f32 %v728_v53, %v730_v33  ;;  %v2546_v18 = vrot.slane %v1963_v2, %v3467_v40 }
 0x17f   :  { %v2670_v0 = vsel %vm2633_vm9, %v2298_v15, %v2669_v46  ;;  %v2721_v31 = vsel %vm2623_vm4, %v2534_v7, %v2530_v21  ;;  %v2550_v6 = vrot.slane %v1964_v4, %v3467_v40  ;;  %v2554_v32 = vrot.slane %v1965_v3, %v3467_v40  ;;  %v4334_v4 = vld [vmem:[#allocation6_spill] sm:$0xff]  ;;  %v4336_v7 = vld [vmem:[#allocation12_spill] sm:$0xff] }
 0x180   :  { %v2671_v61 = vsel %vm2635_vm10, %v2302_v42, %v2670_v0  ;;  %v2722_v20 = vsel %vm2625_vm5, %v2538_v57, %v2721_v31  ;;  %v2897_v53 = vrot.slane %v1027_v22, 9  ;;  %v1292_v27 = vcombine.high %v764_v23, %v764_v23 }
 0x181   :  { %2764 = vst.msk [vmem:[%s4306_s3 + $0x28] sm:$0xff] %vm2758_vm11, %v2671_v61  ;;  %v2723_v15 = vsel %vm2627_vm6, %v2542_v12, %v2722_v20  ;;  %v1036_v10 = vcombine.high %v1034_v11, %v1034_v11  ;;  %v2898_v48 = vrot.slane %v1035_v19, 9  ;;  %v1299_v44 = vrot.slane %v764_v23, %v3463_v26 }
 0x182   :  { %v2724_v43 = vsel %vm2629_vm7, %v2546_v18, %v2723_v15  ;;  %v2558_v42 = vrot.slane %v1966_v56, %v3467_v40  ;;  %v473_v36 = vadd.f32 %v3964_v49, %v4334_v4  ;;  %v4148_v3 = vrot.slane %v1292_v27, %v3463_v26 }
 0x183   :  { %v2725_v2 = vsel %vm2631_vm8, %v2550_v6, %v2724_v43  ;;  %v633_v35 = vadd.f32 %v3964_v49, %v4335_v41  ;;  %v2899_v47 = vrot.slane %v1034_v11, 9  ;;  %v1307_v13 = vcombine.high %v1299_v44, %v1299_v44 }
 0x184   :  { %v2726_v17 = vsel %vm2633_vm9, %v2554_v32, %v2725_v2  ;;  %v4154_v59 = vmax.f32 %v1027_v22, %v2897_v53  ;;  %v2900_v9 = vrot.slane %v1036_v10, 9  ;;  %v4160_v25 = vmax.f32 %v1035_v19, %v2898_v48 }
 0x185   :  { %v2727_v50 = vsel %vm2635_vm10, %v2558_v42, %v2726_v17  ;;  %v483_v63 = vadd.f32 %v3964_v49, %v3729_v55  ;;  %v1308_v30 = vcombine.high %v4148_v3, %v4148_v3  ;;  %v2961_v58 = vrot.slane %v1299_v44, 9 }
 0x186   :  { %2772 = vst.msk [vmem:[%s4306_s3 + $0x68] sm:$0xff] %vm2758_vm11, %v2727_v50  ;;  %v2962_v52 = vrot.slane %v1307_v13, 9  ;;  %v643_v1 = vadd.f32 %v3964_v49, %v3731_v34  ;;  %v695_v39 = vmax.f32 %v473_v36, 0.0  ;;  %v727_v62 = vmax.f32 %v633_v35, 0.0 }
 0x187   :  { %v4168_v38 = vmax.f32 %v1034_v11, %v2899_v47  ;;  %v697_v5 = vmax.f32 %v483_v63, 0.0  ;;  %v2322_v33 = vrot.slane %v4154_v59, %v3467_v40  ;;  %v498_v55 = vadd.f32 %v3964_v49, %v3739_v60 }
 0x188   :  { %v729_v24 = vmax.f32 %v643_v1, 0.0  ;;  %v658_v45 = vadd.f32 %v3964_v49, %v3741_v16  ;;  %v4176_v29 = vmax.f32 %v1036_v10, %v2900_v9  ;;  %v2326_v34 = vrot.slane %v4160_v25, %v3467_v40 }
 0x189   :  { %v2963_v51 = vrot.slane %v4148_v3, 9  ;;  %v747_v54 = vmax.f32 %v695_v39, %v697_v5  ;;  %v2964_v21 = vrot.slane %v1308_v30, 9  ;;  %v4181_v37 = vmax.f32 %v1299_v44, %v2961_v58 }
 0x18a   :  { %v4183_v22 = vmax.f32 %v1307_v13, %v2962_v52  ;;  %v763_v28 = vmax.f32 %v727_v62, %v729_v24  ;;  %v508_v16 = vadd.f32 %v3964_v49, %v3765_v8  ;;  %v668_v57 = vadd.f32 %v3964_v49, %v4336_v7 }
 0x18b   :  { %v1003_v14 = vcombine.high %v747_v54, %v747_v54  ;;  %v1010_v60 = vrot.slane %v747_v54, %v3463_v26  ;;  %v700_v11 = vmax.f32 %v498_v55, 0.0  ;;  %v732_v19 = vmax.f32 %v658_v45, 0.0 }
 0x18c   :  { %v1275_v56 = vcombine.high %v763_v28, %v763_v28  ;;  %v1282_v46 = vrot.slane %v763_v28, %v3463_v26  ;;  %v702_v23 = vmax.f32 %v508_v16, 0.0  ;;  %v734_v20 = vmax.f32 %v668_v57, 0.0 }
 0x18d   :  { %v1017_v0 = vrot.slane %v1003_v14, %v3463_v26  ;;  %v1018_v12 = vcombine.high %v1010_v60, %v1010_v60  ;;  %v2893_v31 = vrot.slane %v1010_v60, 9  ;;  %v1973_v39 = vmax.f32 %v4148_v3, %v2963_v51 }
 0x18e   :  { %v1289_v18 = vrot.slane %v1275_v56, %v3463_v26  ;;  %v1290_v6 = vcombine.high %v1282_v46, %v1282_v46  ;;  %v2957_v61 = vrot.slane %v1282_v46, 9  ;;  %v750_v9 = vmax.f32 %v700_v11, %v702_v23 }
 0x18f   :  { %v1019_v32 = vcombine.high %v1017_v0, %v1017_v0  ;;  %v2894_v8 = vrot.slane %v1018_v12, 9  ;;  %v2895_v15 = vrot.slane %v1017_v0, 9  ;;  %v1903_v53 = vmax.f32 %v1010_v60, %v2893_v31  ;;  %v4338_v31 = vld [vmem:[#allocation11_spill] sm:$0xff] }
 0x190   :  { %v1291_v27 = vcombine.high %v1289_v18, %v1289_v18  ;;  %v2958_v43 = vrot.slane %v1290_v6, 9  ;;  %v2959_v10 = vrot.slane %v1289_v18, 9  ;;  %v1967_v48 = vmax.f32 %v1282_v46, %v2957_v61  ;;  %v4339_v61 = vld [vmem:[#allocation13_spill] sm:$0xff] }
 0x191   :  { %v2896_v44 = vrot.slane %v1019_v32, 9  ;;  %v1904_v42 = vmax.f32 %v1018_v12, %v2894_v8  ;;  %v1905_v2 = vmax.f32 %v1017_v0, %v2895_v15  ;;  %v2306_v4 = vrot.slane %v1903_v53, %v3467_v40  ;;  %v4340_v15 = vld [vmem:[#allocation14_spill] sm:$0xff] }
 0x192   :  { %v2960_v36 = vrot.slane %v1291_v27, 9  ;;  %v1968_v17 = vmax.f32 %v1290_v6, %v2958_v43  ;;  %v1969_v41 = vmax.f32 %v1289_v18, %v2959_v10  ;;  %v2562_v35 = vrot.slane %v1967_v48, %v3467_v40 }
 0x193   :  { %v1906_v47 = vmax.f32 %v1019_v32, %v2896_v44  ;;  %v2310_v13 = vrot.slane %v1904_v42, %v3467_v40  ;;  %v2314_v50 = vrot.slane %v1905_v2, %v3467_v40  ;;  %v766_v1 = vmax.f32 %v732_v19, %v734_v20 }
 0x194   :  { %v1970_v63 = vmax.f32 %v1291_v27, %v2960_v36  ;;  %v2566_v58 = vrot.slane %v1968_v17, %v3467_v40  ;;  %v2570_v52 = vrot.slane %v1969_v41, %v3467_v40  ;;  %v1974_v62 = vmax.f32 %v1308_v30, %v2964_v21 }
 0x195   :  { %v2318_v5 = vrot.slane %v1906_v47, %v3467_v40  ;;  %v2672_v24 = vsel %vm2623_vm4, %v2310_v13, %v2306_v4  ;;  %v2578_v55 = vrot.slane %v4181_v37, %v3467_v40  ;;  %v1054_v16 = vcombine.high %v750_v9, %v750_v9 }
 0x196   :  { %v2673_v45 = vsel %vm2625_vm5, %v2314_v50, %v2672_v24  ;;  %v2574_v54 = vrot.slane %v1970_v63, %v3467_v40  ;;  %v2728_v28 = vsel %vm2623_vm4, %v2566_v58, %v2562_v35  ;;  %v1061_v3 = vrot.slane %v750_v9, %v3463_v26 }
 0x197   :  { %v2674_v14 = vsel %vm2627_vm6, %v2318_v5, %v2673_v45  ;;  %v2729_v60 = vsel %vm2625_vm5, %v2570_v52, %v2728_v28  ;;  %v2330_v30 = vrot.slane %v4168_v38, %v3467_v40  ;;  %v2582_v51 = vrot.slane %v4183_v22, %v3467_v40 }
 0x198   :  { %v2675_v21 = vsel %vm2629_vm7, %v2322_v33, %v2674_v14  ;;  %v2730_v37 = vsel %vm2627_vm6, %v2574_v54, %v2729_v60  ;;  %v2334_v7 = vrot.slane %v4176_v29, %v3467_v40  ;;  %v2586_v57 = vrot.slane %v1973_v39, %v3467_v40 }
 0x199   :  { %v2676_v38 = vsel %vm2631_vm8, %v2326_v34, %v2675_v21  ;;  %v2731_v56 = vsel %vm2629_vm7, %v2578_v55, %v2730_v37  ;;  %v2590_v22 = vrot.slane %v1974_v62, %v3467_v40  ;;  %v1068_v29 = vrot.slane %v1054_v16, %v3463_v26  ;;  %v4337_v34 = vld [vmem:[#allocation10_spill] sm:$0xff] }
 0x19a   :  { %v2677_v59 = vsel %vm2633_vm9, %v2330_v30, %v2676_v38  ;;  %v2732_v33 = vsel %vm2631_vm8, %v2582_v51, %v2731_v56  ;;  %v1069_v19 = vcombine.high %v1061_v3, %v1061_v3  ;;  %v493_v0 = vadd.f32 %v3964_v49, %v4337_v34 }
 0x19b   :  { %v2678_v46 = vsel %vm2635_vm10, %v2334_v7, %v2677_v59  ;;  %v2733_v11 = vsel %vm2633_vm9, %v2586_v57, %v2732_v33  ;;  %v2905_v12 = vrot.slane %v1061_v3, 9  ;;  %v653_v23 = vadd.f32 %v3964_v49, %v4338_v31 }
 0x19c   :  { %2765 = vst.msk [vmem:[%s4306_s3 + $0x30] sm:$0xff] %vm2758_vm11, %v2678_v46  ;;  %v2734_v25 = vsel %vm2635_vm10, %v2590_v22, %v2733_v11  ;;  %v1326_v18 = vcombine.high %v766_v1, %v766_v1  ;;  %v1333_v6 = vrot.slane %v766_v1, %v3463_v26  ;;  %v503_v20 = vadd.f32 %v3964_v49, %v4339_v61 }
 0x19d   :  { %2773 = vst.msk [vmem:[%s4306_s3 + $0x70] sm:$0xff] %vm2758_vm11, %v2734_v25  ;;  %v1070_v32 = vcombine.high %v1068_v29, %v1068_v29  ;;  %v2906_v8 = vrot.slane %v1069_v19, 9  ;;  %v663_v53 = vadd.f32 %v3964_v49, %v4340_v15  ;;  %v699_v27 = vmax.f32 %v493_v0, 0.0 }
 0x19e   :  { %v2907_v43 = vrot.slane %v1068_v29, 9  ;;  %v4251_v10 = vmax.f32 %v1061_v3, %v2905_v12  ;;  %v701_v48 = vmax.f32 %v503_v20, 0.0  ;;  %v731_v44 = vmax.f32 %v653_v23, 0.0 }
 0x19f   :  { %v1340_v42 = vrot.slane %v1326_v18, %v3463_v26  ;;  %v733_v2 = vmax.f32 %v663_v53, 0.0  ;;  %v1341_v4 = vcombine.high %v1333_v6, %v1333_v6  ;;  %v2908_v17 = vrot.slane %v1070_v32, 9 }
 0x1a0   :  { %v749_v36 = vmax.f32 %v699_v27, %v701_v48  ;;  %v4254_v41 = vmax.f32 %v1069_v19, %v2906_v8  ;;  %v2969_v35 = vrot.slane %v1333_v6, 9  ;;  %v4256_v13 = vmax.f32 %v1068_v29, %v2907_v43 }
 0x1a1   :  { %v765_v47 = vmax.f32 %v731_v44, %v733_v2  ;;  %v2354_v49 = vrot.slane %v4251_v10, %v3467_v40  ;;  %v1342_v63 = vcombine.high %v1340_v42, %v1340_v42  ;;  %v2971_v58 = vrot.slane %v1340_v42, 9 }
 0x1a2   :  { %v1037_v50 = vcombine.high %v749_v36, %v749_v36  ;;  %v1044_v9 = vrot.slane %v749_v36, %v3463_v26  ;;  %v2970_v39 = vrot.slane %v1341_v4, 9  ;;  %v1979_v55 = vmax.f32 %v1333_v6, %v2969_v35 }
 0x1a3   :  { %v1309_v52 = vcombine.high %v765_v47, %v765_v47  ;;  %v1316_v1 = vrot.slane %v765_v47, %v3463_v26  ;;  %v2972_v7 = vrot.slane %v1342_v63, 9  ;;  %v1918_v31 = vmax.f32 %v1070_v32, %v2908_v17 }
 0x1a4   :  { %v1051_v62 = vrot.slane %v1037_v50, %v3463_v26  ;;  %v1052_v5 = vcombine.high %v1044_v9, %v1044_v9  ;;  %v2901_v24 = vrot.slane %v1044_v9, 9  ;;  %v1980_v22 = vmax.f32 %v1341_v4, %v2970_v39 }
 0x1a5   :  { %v1323_v45 = vrot.slane %v1309_v52, %v3463_v26  ;;  %v1324_v54 = vcombine.high %v1316_v1, %v1316_v1  ;;  %v2965_v28 = vrot.slane %v1316_v1, 9  ;;  %v1981_v23 = vmax.f32 %v1340_v42, %v2971_v58 }
 0x1a6   :  { %v1053_v14 = vcombine.high %v1051_v62, %v1051_v62  ;;  %v2902_v60 = vrot.slane %v1052_v5, 9  ;;  %v2903_v16 = vrot.slane %v1051_v62, 9  ;;  %v1911_v3 = vmax.f32 %v1044_v9, %v2901_v24 }
 0x1a7   :  { %v1325_v30 = vcombine.high %v1323_v45, %v1323_v45  ;;  %v2966_v51 = vrot.slane %v1324_v54, 9  ;;  %v2967_v21 = vrot.slane %v1323_v45, 9  ;;  %v1975_v37 = vmax.f32 %v1316_v1, %v2965_v28 }
 0x1a8   :  { %v2904_v57 = vrot.slane %v1053_v14, 9  ;;  %v1912_v38 = vmax.f32 %v1052_v5, %v2902_v60  ;;  %v1913_v56 = vmax.f32 %v1051_v62, %v2903_v16  ;;  %v2338_v26 = vrot.slane %v1911_v3, %v3467_v40 }
 0x1a9   :  { %v2968_v59 = vrot.slane %v1325_v30, 9  ;;  %v1976_v33 = vmax.f32 %v1324_v54, %v2966_v51  ;;  %v1977_v46 = vmax.f32 %v1323_v45, %v2967_v21  ;;  %v2594_v34 = vrot.slane %v1975_v37, %v3467_v40 }
 0x1aa   :  { %v1914_v11 = vmax.f32 %v1053_v14, %v2904_v57  ;;  %v2342_v29 = vrot.slane %v1912_v38, %v3467_v40  ;;  %v2346_v19 = vrot.slane %v1913_v56, %v3467_v40  ;;  %v1982_v61 = vmax.f32 %v1342_v63, %v2972_v7 }
 0x1ab   :  { %v1978_v25 = vmax.f32 %v1325_v30, %v2968_v59  ;;  %v2598_v0 = vrot.slane %v1976_v33, %v3467_v40  ;;  %v2602_v12 = vrot.slane %v1977_v46, %v3467_v40  ;;  %v2358_v53 = vrot.slane %v4254_v41, %v3467_v40 }
 0x1ac   :  { %v2350_v18 = vrot.slane %v1914_v11, %v3467_v40  ;;  %v2679_v6 = vsel %vm2623_vm4, %v2342_v29, %v2338_v26  ;;  %v2610_v27 = vrot.slane %v1979_v55, %v3467_v40  ;;  %v2362_v10 = vrot.slane %v4256_v13, %v3467_v40 }
 0x1ad   :  { %v2680_v20 = vsel %vm2625_vm5, %v2346_v19, %v2679_v6  ;;  %v2606_v8 = vrot.slane %v1978_v25, %v3467_v40  ;;  %v2735_v15 = vsel %vm2623_vm4, %v2598_v0, %v2594_v34  ;;  %v2614_v48 = vrot.slane %v1980_v22, %v3467_v40 }
 0x1ae   :  { %v2681_v43 = vsel %vm2627_vm6, %v2350_v18, %v2680_v20  ;;  %v2736_v32 = vsel %vm2625_vm5, %v2602_v12, %v2735_v15  ;;  %v2366_v2 = vrot.slane %v1918_v31, %v3467_v40  ;;  %v2618_v4 = vrot.slane %v1981_v23, %v3467_v40 }
 0x1af   :  { %v2682_v44 = vsel %vm2629_vm7, %v2354_v49, %v2681_v43  ;;  %v2737_v42 = vsel %vm2627_vm6, %v2606_v8, %v2736_v32  ;;  %v2622_v41 = vrot.slane %v1982_v61, %v3467_v40 }
 0x1b0   :  { %v2683_v36 = vsel %vm2631_vm8, %v2358_v53, %v2682_v44  ;;  %v2738_v17 = vsel %vm2629_vm7, %v2610_v27, %v2737_v42 }
 0x1b1   :  { %v2684_v35 = vsel %vm2633_vm9, %v2362_v10, %v2683_v36  ;;  %v2739_v47 = vsel %vm2631_vm8, %v2614_v48, %v2738_v17 }
 0x1b2   :  { %v2685_v13 = vsel %vm2635_vm10, %v2366_v2, %v2684_v35  ;;  %v2740_v49 = vsel %vm2633_vm9, %v2618_v4, %v2739_v47 }
 0x1b3   :  { %2766 = vst.msk [vmem:[%s4306_s3 + $0x38] sm:$0xff] %vm2758_vm11, %v2685_v13  ;;  %v2741_v50 = vsel %vm2635_vm10, %v2622_v41, %v2740_v49 }
 0x1b4   :  { %2774 = vst.msk [vmem:[%s4306_s3 + $0x78] sm:$0xff] %vm2758_vm11, %v2741_v50 }

// kernel: custom_cnn_forward.5
= control target key start
LH: loop header
LB: loop body
LE: loop exit
PB: predicated region body
PF: predicated region fallthrough
CT: control target
= control target key end

     0   :  { %v959_v7 = vmov 0.0   ;;  %s1726_s0 = inlined_call_operand.vmem [shape: f32[2,128], index: 0, kind: input, shape index: {}]   ;;  %s1727_s1 = inlined_call_operand.vmem [shape: f32[128,512], index: 1, kind: input, shape index: {}]   ;;  %s1728_s2 = inlined_call_operand.vmem [shape: f32[1,512], index: 2, kind: input, shape index: {}]   ;;  %s1729_s3 = inlined_call_operand.vmem [shape: f32[512,256], index: 3, kind: input, shape index: {}]   ;;  %s1730_s4 = inlined_call_operand.vmem [shape: f32[1,256], index: 4, kind: input, shape index: {}]   ;;  %s1731_s5 = inlined_call_operand.vmem [shape: f32[256,2], index: 5, kind: input, shape index: {}]   ;;  %s1732_s6 = inlined_call_operand.vmem [shape: f32[1,2], index: 6, kind: input, shape index: {}]   ;;  %s1733_s7 = inlined_call_operand.hbm [shape: f32[2,2], index: 7, kind: output, shape index: {}]  }
   0x1   :  { %v29_v0 = vld [vmem:[%s1727_s1 + $0x8] sm:$0xff]  ;;  %v28_v2 = vld [vmem:[%s1727_s1] sm:$0xff]  ;;  %178 = vmatprep.mubr.f32.mxu1 %v959_v7  ;;  %v263_v45 = vld [vmem:[%s1729_s3 + $0x18] sm:$0xff] }
   0x2   :  { %v33_v1 = vld [vmem:[%s1727_s1 + $0x28] sm:$0xff]  ;;  %v32_v4 = vld [vmem:[%s1727_s1 + $0x20] sm:$0xff]  ;;  %v262_v47 = vld [vmem:[%s1729_s3 + $0x10] sm:$0xff] }
   0x3   :  { %v705_v3 = vpack.c.bf16 %v33_v1, %v29_v0  ;;  %v37_v5 = vld [vmem:[%s1727_s1 + $0x48] sm:$0xff]  ;;  %v707_v8 = vpack.c.bf16 %v32_v4, %v28_v2  ;;  %v36_v10 = vld [vmem:[%s1727_s1 + $0x40] sm:$0xff]  ;;  %v267_v51 = vld [vmem:[%s1729_s3 + $0x38] sm:$0xff] }
   0x4   :  { %v41_v6 = vld [vmem:[%s1727_s1 + $0x68] sm:$0xff]  ;;  %v40_v11 = vld [vmem:[%s1727_s1 + $0x60] sm:$0xff]  ;;  %v266_v55 = vld [vmem:[%s1729_s3 + $0x30] sm:$0xff] }
   0x5   :  { %v709_v9 = vpack.c.bf16 %v41_v6, %v37_v5  ;;  %v45_v12 = vld [vmem:[%s1727_s1 + $0x88] sm:$0xff]  ;;  %706 = vmatprep.subr.bf16.mxu1 %v705_v3  ;;  %v711_v14 = vpack.c.bf16 %v40_v11, %v36_v10  ;;  %v44_v16 = vld [vmem:[%s1727_s1 + $0x80] sm:$0xff]  ;;  %v271_v57 = vld [vmem:[%s1729_s3 + $0x58] sm:$0xff] }
   0x6   :  { %v49_v13 = vld [vmem:[%s1727_s1 + $0xa8] sm:$0xff]  ;;  %708 = vmatpush1.bf16.msra.mxu1 %v707_v8  ;;  %v48_v17 = vld [vmem:[%s1727_s1 + $0xa0] sm:$0xff]  ;;  %v31_v61 = vld [vmem:[%s1727_s1 + $0x18] sm:$0xff] }
   0x7   :  { %710 = vmatprep.subr.bf16.mxu1 %v709_v9  ;;  %v713_v15 = vpack.c.bf16 %v49_v13, %v45_v12  ;;  %v53_v18 = vld [vmem:[%s1727_s1 + $0xc8] sm:$0xff]  ;;  %v715_v20 = vpack.c.bf16 %v48_v17, %v44_v16  ;;  %v52_v22 = vld [vmem:[%s1727_s1 + $0xc0] sm:$0xff]  ;;  %v35_v62 = vld [vmem:[%s1727_s1 + $0x38] sm:$0xff] }
   0x8   :  { %v57_v19 = vld [vmem:[%s1727_s1 + $0xe8] sm:$0xff]  ;;  %v56_v23 = vld [vmem:[%s1727_s1 + $0xe0] sm:$0xff]  ;;  %v270_v2 = vld [vmem:[%s1729_s3 + $0x50] sm:$0xff]  ;;  %v737_v6 = vpack.c.bf16 %v35_v62, %v31_v61 }
   0x9   :  { %v717_v21 = vpack.c.bf16 %v57_v19, %v53_v18  ;;  %v61_v24 = vld [vmem:[%s1727_s1 + $0x108] sm:$0xff]  ;;  %v719_v26 = vpack.c.bf16 %v56_v23, %v52_v22  ;;  %v60_v28 = vld [vmem:[%s1727_s1 + $0x100] sm:$0xff]  ;;  %v275_v5 = vld [vmem:[%s1729_s3 + $0x78] sm:$0xff] }
   0xa   :  { %712 = vmatpush1.bf16.msra.mxu1 %v711_v14  ;;  %v65_v25 = vld [vmem:[%s1727_s1 + $0x128] sm:$0xff]  ;;  %v64_v29 = vld [vmem:[%s1727_s1 + $0x120] sm:$0xff]  ;;  %v30_v8 = vld [vmem:[%s1727_s1 + $0x10] sm:$0xff] }
   0xb   :  { %714 = vmatprep.subr.bf16.mxu1 %v713_v15  ;;  %v721_v27 = vpack.c.bf16 %v65_v25, %v61_v24  ;;  %v69_v30 = vld [vmem:[%s1727_s1 + $0x148] sm:$0xff]  ;;  %v723_v32 = vpack.c.bf16 %v64_v29, %v60_v28  ;;  %v68_v34 = vld [vmem:[%s1727_s1 + $0x140] sm:$0xff]  ;;  %v34_v9 = vld [vmem:[%s1727_s1 + $0x30] sm:$0xff] }
   0xc   :  { %v73_v31 = vld [vmem:[%s1727_s1 + $0x168] sm:$0xff]  ;;  %v72_v35 = vld [vmem:[%s1727_s1 + $0x160] sm:$0xff]  ;;  %v39_v10 = vld [vmem:[%s1727_s1 + $0x58] sm:$0xff]  ;;  %v739_v17 = vpack.c.bf16 %v34_v9, %v30_v8 }
   0xd   :  { %v725_v33 = vpack.c.bf16 %v73_v31, %v69_v30  ;;  %v77_v36 = vld [vmem:[%s1727_s1 + $0x188] sm:$0xff]  ;;  %v727_v38 = vpack.c.bf16 %v72_v35, %v68_v34  ;;  %v76_v39 = vld [vmem:[%s1727_s1 + $0x180] sm:$0xff]  ;;  %v43_v11 = vld [vmem:[%s1727_s1 + $0x78] sm:$0xff] }
   0xe   :  { %716 = vmatpush1.bf16.msra.mxu1 %v715_v20  ;;  %v81_v37 = vld [vmem:[%s1727_s1 + $0x1a8] sm:$0xff]  ;;  %v80_v40 = vld [vmem:[%s1727_s1 + $0x1a0] sm:$0xff]  ;;  %v274_v15 = vld [vmem:[%s1729_s3 + $0x70] sm:$0xff]  ;;  %v741_v20 = vpack.c.bf16 %v43_v11, %v39_v10 }
   0xf   :  { %718 = vmatprep.subr.bf16.mxu1 %v717_v21  ;;  %v729_v41 = vpack.c.bf16 %v81_v37, %v77_v36  ;;  %v85_v42 = vld [vmem:[%s1727_s1 + $0x1c8] sm:$0xff]  ;;  %v260_v46 = vld [vmem:[%s1729_s3] sm:$0xff]  ;;  %v731_v53 = vpack.c.bf16 %v80_v40, %v76_v39  ;;  %v279_v19 = vld [vmem:[%s1729_s3 + $0x98] sm:$0xff] }
  0x10   :  { %v89_v43 = vld [vmem:[%s1727_s1 + $0x1e8] sm:$0xff]  ;;  %v771_v49 = vpack.c.bf16 %v262_v47, %v260_v46  ;;  %v264_v52 = vld [vmem:[%s1729_s3 + $0x20] sm:$0xff]  ;;  %v38_v21 = vld [vmem:[%s1727_s1 + $0x50] sm:$0xff] }
  0x11   :  { %v261_v44 = vld [vmem:[%s1729_s3 + $0x8] sm:$0xff]  ;;  %v733_v58 = vpack.c.bf16 %v89_v43, %v85_v42  ;;  %v84_v59 = vld [vmem:[%s1727_s1 + $0x1c0] sm:$0xff]  ;;  %v775_v63 = vpack.c.bf16 %v266_v55, %v264_v52  ;;  %v42_v22 = vld [vmem:[%s1727_s1 + $0x70] sm:$0xff] }
  0x12   :  { %720 = vmatpush1.bf16.msra.mxu1 %v719_v26  ;;  %v769_v48 = vpack.c.bf16 %v263_v45, %v261_v44  ;;  %v265_v50 = vld [vmem:[%s1729_s3 + $0x28] sm:$0xff]  ;;  %v88_v60 = vld [vmem:[%s1727_s1 + $0x1e0] sm:$0xff]  ;;  %v47_v23 = vld [vmem:[%s1727_s1 + $0x98] sm:$0xff]  ;;  %v743_v29 = vpack.c.bf16 %v42_v22, %v38_v21 }
  0x13   :  { %722 = vmatprep.subr.bf16.mxu1 %v721_v27  ;;  %v773_v54 = vpack.c.bf16 %v267_v51, %v265_v50  ;;  %v269_v56 = vld [vmem:[%s1729_s3 + $0x48] sm:$0xff]  ;;  %v268_v1 = vld [vmem:[%s1729_s3 + $0x40] sm:$0xff]  ;;  %v735_v3 = vpack.c.bf16 %v88_v60, %v84_v59  ;;  %v51_v24 = vld [vmem:[%s1727_s1 + $0xb8] sm:$0xff] }
  0x14   :  { %770 = vmatprep.subr.bf16.mxu0 %v769_v48  ;;  %v777_v0 = vpack.c.bf16 %v271_v57, %v269_v56  ;;  %v273_v4 = vld [vmem:[%s1729_s3 + $0x68] sm:$0xff]  ;;  %v779_v12 = vpack.c.bf16 %v270_v2, %v268_v1  ;;  %v272_v14 = vld [vmem:[%s1729_s3 + $0x60] sm:$0xff]  ;;  %v278_v28 = vld [vmem:[%s1729_s3 + $0x90] sm:$0xff] }
  0x15   :  { %772 = vmatpush1.bf16.msra.mxu0 %v771_v49  ;;  %v781_v13 = vpack.c.bf16 %v275_v5, %v273_v4  ;;  %v1167_v16 = vld [vmem:[%s1726_s0] sm:$0x3]  ;;  %v277_v18 = vld [vmem:[%s1729_s3 + $0x88] sm:$0xff]  ;;  %v783_v25 = vpack.c.bf16 %v274_v15, %v272_v14  ;;  %v283_v31 = vld [vmem:[%s1729_s3 + $0xb8] sm:$0xff] }
  0x16   :  { %724 = vmatpush1.bf16.msra.mxu1 %v723_v32  ;;  %774 = vmatprep.subr.bf16.mxu0 %v773_v54  ;;  %v785_v26 = vpack.c.bf16 %v279_v19, %v277_v18  ;;  %v276_v27 = vld [vmem:[%s1729_s3 + $0x80] sm:$0xff]  ;;  %v281_v30 = vld [vmem:[%s1729_s3 + $0xa8] sm:$0xff]  ;;  %v745_v32 = vpack.c.bf16 %v51_v24, %v47_v23  ;;  %v50_v34 = vld [vmem:[%s1727_s1 + $0xb0] sm:$0xff] }
  0x17   :  { %726 = vmatprep.subr.bf16.mxu1 %v725_v33  ;;  %v46_v33 = vld [vmem:[%s1727_s1 + $0x90] sm:$0xff]  ;;  %v59_v35 = vld [vmem:[%s1727_s1 + $0xf8] sm:$0xff]  ;;  %v787_v36 = vpack.c.bf16 %v278_v28, %v276_v27  ;;  %v789_v37 = vpack.c.bf16 %v283_v31, %v281_v30 }
  0x18   :  { %v282_v39 = vld [vmem:[%s1729_s3 + $0xb0] sm:$0xff]  ;;  %v747_v40 = vpack.c.bf16 %v50_v34, %v46_v33  ;;  %v287_v42 = vld [vmem:[%s1729_s3 + $0xd8] sm:$0xff] }
  0x19   :  { %776 = vmatpush1.bf16.msra.mxu0 %v775_v63  ;;  %v54_v44 = vld [vmem:[%s1727_s1 + $0xd0] sm:$0xff]  ;;  %v63_v46 = vld [vmem:[%s1727_s1 + $0x118] sm:$0xff] }
  0x1a   :  { %728 = vmatpush1.bf16.msra.mxu1 %v727_v38  ;;  %778 = vmatprep.subr.bf16.mxu0 %v777_v0  ;;  %v280_v38 = vld [vmem:[%s1729_s3 + $0xa0] sm:$0xff]  ;;  %v58_v45 = vld [vmem:[%s1727_s1 + $0xf0] sm:$0xff]  ;;  %v67_v47 = vld [vmem:[%s1727_s1 + $0x138] sm:$0xff] }
  0x1b   :  { %730 = vmatprep.subr.bf16.mxu1 %v729_v41  ;;  %v285_v41 = vld [vmem:[%s1729_s3 + $0xc8] sm:$0xff]  ;;  %v791_v48 = vpack.c.bf16 %v282_v39, %v280_v38 }
  0x1d   :  { %780 = vmatpush1.bf16.msra.mxu0 %v779_v12 }
  0x1e   :  { %732 = vmatpush1.bf16.msra.mxu1 %v731_v53  ;;  %782 = vmatprep.subr.bf16.mxu0 %v781_v13 }
  0x1f   :  { %734 = vmatprep.subr.bf16.mxu1 %v733_v58 }
  0x21   :  { %784 = vmatpush1.bf16.msra.mxu0 %v783_v25 }
  0x22   :  { %736 = vmatpush1.bf16.msra.mxu1 %v735_v3  ;;  %786 = vmatprep.subr.bf16.mxu0 %v785_v26 }
  0x23   :  { %738 = vmatprep.subr.bf16.mxu1 %v737_v6 }
  0x25   :  { %179 = vmatmul.mubr.f32.vlgmr.msra.gmra.mrb[0].mxu1 %v1167_v16  ;;  %788 = vmatpush1.bf16.msra.mxu0 %v787_v36 }
  0x26   :  { %740 = vmatpush1.bf16.msra.mxu1 %v739_v17  ;;  %249 = vmatprep.mubr.f32.mxu1 %v959_v7  ;;  %v55_v7 = vld [vmem:[%s1727_s1 + $0xd8] sm:$0xff] }
  0x27   :  { %742 = vmatprep.subr.bf16.mxu1 %v741_v20  ;;  %v749_v43 = vpack.c.bf16 %v59_v35, %v55_v7 }
  0x2a   :  { %744 = vmatpush1.bf16.msra.mxu1 %v743_v29 }
  0x2b   :  { %746 = vmatprep.subr.bf16.mxu1 %v745_v32 }
  0x2c   :  { %12 = vsyncpa [#allocation3], 0  ;;  %790 = vmatprep.subr.bf16.mxu0 %v789_v37  ;;  %v793_v49 = vpack.c.bf16 %v287_v42, %v285_v41  ;;  %v284_v50 = vld [vmem:[%s1729_s3 + $0xc0] sm:$0xff]  ;;  %v286_v51 = vld [vmem:[%s1729_s3 + $0xd0] sm:$0xff]  ;;  %v751_v52 = vpack.c.bf16 %v58_v45, %v54_v44  ;;  %v753_v55 = vpack.c.bf16 %v67_v47, %v63_v46  ;;  %vm653_vm0 = vcmask 9216  }
  0x2d   :  { %v289_v53 = vld [vmem:[%s1729_s3 + $0xe8] sm:$0xff]  ;;  %v291_v54 = vld [vmem:[%s1729_s3 + $0xf8] sm:$0xff]  ;;  %v62_v56 = vld [vmem:[%s1727_s1 + $0x110] sm:$0xff]  ;;  %792 = vmatpush1.bf16.msra.mxu0 %v791_v48  ;;  %v795_v60 = vpack.c.bf16 %v286_v51, %v284_v50 }
  0x2e   :  { %748 = vmatpush1.bf16.msra.mxu1 %v747_v40  ;;  %v66_v57 = vld [vmem:[%s1727_s1 + $0x130] sm:$0xff]  ;;  %v71_v58 = vld [vmem:[%s1727_s1 + $0x158] sm:$0xff]  ;;  %794 = vmatprep.subr.bf16.mxu0 %v793_v49  ;;  %v797_v61 = vpack.c.bf16 %v291_v54, %v289_v53  ;;  %v288_v62 = vld [vmem:[%s1729_s3 + $0xe0] sm:$0xff] }
  0x2f   :  { %750 = vmatprep.subr.bf16.mxu1 %v749_v43  ;;  %v75_v59 = vld [vmem:[%s1727_s1 + $0x178] sm:$0xff]  ;;  %v290_v63 = vld [vmem:[%s1729_s3 + $0xf0] sm:$0xff]  ;;  %v755_v0 = vpack.c.bf16 %v66_v57, %v62_v56  ;;  %v293_v1 = vld [vmem:[%s1729_s3 + $0x108] sm:$0xff] }
  0x30   :  { %v295_v2 = vld [vmem:[%s1729_s3 + $0x118] sm:$0xff]  ;;  %v757_v3 = vpack.c.bf16 %v75_v59, %v71_v58  ;;  %v70_v4 = vld [vmem:[%s1727_s1 + $0x150] sm:$0xff]  ;;  %v799_v9 = vpack.c.bf16 %v290_v63, %v288_v62  ;;  %v292_v11 = vld [vmem:[%s1729_s3 + $0x100] sm:$0xff] }
  0x31   :  { %v74_v5 = vld [vmem:[%s1727_s1 + $0x170] sm:$0xff]  ;;  %v79_v6 = vld [vmem:[%s1727_s1 + $0x198] sm:$0xff]  ;;  %796 = vmatpush1.bf16.msra.mxu0 %v795_v60  ;;  %v801_v10 = vpack.c.bf16 %v295_v2, %v293_v1  ;;  %v297_v14 = vld [vmem:[%s1729_s3 + $0x128] sm:$0xff] }
  0x32   :  { %752 = vmatpush1.bf16.msra.mxu1 %v751_v52  ;;  %v83_v8 = vld [vmem:[%s1727_s1 + $0x1b8] sm:$0xff]  ;;  %798 = vmatprep.subr.bf16.mxu0 %v797_v61  ;;  %v294_v12 = vld [vmem:[%s1729_s3 + $0x110] sm:$0xff]  ;;  %v759_v13 = vpack.c.bf16 %v74_v5, %v70_v4  ;;  %v296_v24 = vld [vmem:[%s1729_s3 + $0x120] sm:$0xff] }
  0x33   :  { %754 = vmatprep.subr.bf16.mxu1 %v753_v55  ;;  %v299_v15 = vld [vmem:[%s1729_s3 + $0x138] sm:$0xff]  ;;  %v761_v17 = vpack.c.bf16 %v83_v8, %v79_v6  ;;  %v78_v18 = vld [vmem:[%s1727_s1 + $0x190] sm:$0xff]  ;;  %v803_v22 = vpack.c.bf16 %v294_v12, %v292_v11  ;;  %v301_v27 = vld [vmem:[%s1729_s3 + $0x148] sm:$0xff] }
  0x34   :  { %v82_v19 = vld [vmem:[%s1727_s1 + $0x1b0] sm:$0xff]  ;;  %v87_v20 = vld [vmem:[%s1727_s1 + $0x1d8] sm:$0xff]  ;;  %v805_v23 = vpack.c.bf16 %v299_v15, %v297_v14  ;;  %v300_v34 = vld [vmem:[%s1729_s3 + $0x140] sm:$0xff] }
  0x35   :  { %v91_v21 = vld [vmem:[%s1727_s1 + $0x1f8] sm:$0xff]  ;;  %800 = vmatpush1.bf16.msra.mxu0 %v799_v9  ;;  %v298_v25 = vld [vmem:[%s1729_s3 + $0x130] sm:$0xff]  ;;  %v763_v26 = vpack.c.bf16 %v82_v19, %v78_v18  ;;  %v305_v36 = vld [vmem:[%s1729_s3 + $0x168] sm:$0xff] }
  0x36   :  { %756 = vmatpush1.bf16.msra.mxu1 %v755_v0  ;;  %802 = vmatprep.subr.bf16.mxu0 %v801_v10  ;;  %v303_v28 = vld [vmem:[%s1729_s3 + $0x158] sm:$0xff]  ;;  %v765_v29 = vpack.c.bf16 %v91_v21, %v87_v20  ;;  %v86_v30 = vld [vmem:[%s1727_s1 + $0x1d0] sm:$0xff]  ;;  %v807_v32 = vpack.c.bf16 %v298_v25, %v296_v24  ;;  %v304_v40 = vld [vmem:[%s1729_s3 + $0x160] sm:$0xff] }
  0x37   :  { %758 = vmatprep.subr.bf16.mxu1 %v757_v3  ;;  %v90_v31 = vld [vmem:[%s1727_s1 + $0x1f0] sm:$0xff]  ;;  %v809_v33 = vpack.c.bf16 %v303_v28, %v301_v27  ;;  %v307_v37 = vld [vmem:[%s1729_s3 + $0x178] sm:$0xff]  ;;  %v309_v42 = vld [vmem:[%s1729_s3 + $0x188] sm:$0xff] }
  0x38   :  { %v302_v7 = vld [vmem:[%s1729_s3 + $0x150] sm:$0xff]  ;;  %v767_v35 = vpack.c.bf16 %v90_v31, %v86_v30  ;;  %v813_v39 = vpack.c.bf16 %v307_v37, %v305_v36  ;;  %v311_v43 = vld [vmem:[%s1729_s3 + $0x198] sm:$0xff]  ;;  %v308_v46 = vld [vmem:[%s1729_s3 + $0x180] sm:$0xff] }
  0x39   :  { %804 = vmatpush1.bf16.msra.mxu0 %v803_v22  ;;  %v811_v38 = vpack.c.bf16 %v302_v7, %v300_v34  ;;  %v306_v41 = vld [vmem:[%s1729_s3 + $0x170] sm:$0xff]  ;;  %v817_v45 = vpack.c.bf16 %v311_v43, %v309_v42  ;;  %v313_v48 = vld [vmem:[%s1729_s3 + $0x1a8] sm:$0xff]  ;;  %v315_v49 = vld [vmem:[%s1729_s3 + $0x1b8] sm:$0xff] }
  0x3a   :  { %760 = vmatpush1.bf16.msra.mxu1 %v759_v13  ;;  %806 = vmatprep.subr.bf16.mxu0 %v805_v23  ;;  %v815_v44 = vpack.c.bf16 %v306_v41, %v304_v40  ;;  %v310_v47 = vld [vmem:[%s1729_s3 + $0x190] sm:$0xff]  ;;  %v821_v50 = vpack.c.bf16 %v315_v49, %v313_v48  ;;  %v312_v51 = vld [vmem:[%s1729_s3 + $0x1a0] sm:$0xff]  ;;  %v317_v53 = vld [vmem:[%s1729_s3 + $0x1c8] sm:$0xff] }
  0x3b   :  { %762 = vmatprep.subr.bf16.mxu1 %v761_v17  ;;  %v314_v52 = vld [vmem:[%s1729_s3 + $0x1b0] sm:$0xff]  ;;  %v319_v54 = vld [vmem:[%s1729_s3 + $0x1d8] sm:$0xff]  ;;  %v316_v57 = vld [vmem:[%s1729_s3 + $0x1c0] sm:$0xff] }
  0x3c   :  { %v823_v55 = vpack.c.bf16 %v314_v52, %v312_v51  ;;  %v825_v56 = vpack.c.bf16 %v319_v54, %v317_v53  ;;  %v318_v58 = vld [vmem:[%s1729_s3 + $0x1d0] sm:$0xff]  ;;  %v321_v60 = vld [vmem:[%s1729_s3 + $0x1e8] sm:$0xff]  ;;  %v323_v61 = vld [vmem:[%s1729_s3 + $0x1f8] sm:$0xff] }
  0x3d   :  { %808 = vmatpush1.bf16.msra.mxu0 %v807_v32  ;;  %v827_v59 = vpack.c.bf16 %v318_v58, %v316_v57  ;;  %v829_v62 = vpack.c.bf16 %v323_v61, %v321_v60  ;;  %v320_v63 = vld [vmem:[%s1729_s3 + $0x1e0] sm:$0xff]  ;;  %v322_v0 = vld [vmem:[%s1729_s3 + $0x1f0] sm:$0xff]  ;;  %v325_v2 = vld [vmem:[%s1729_s3 + $0x208] sm:$0xff] }
  0x3e   :  { %764 = vmatpush1.bf16.msra.mxu1 %v763_v26  ;;  %810 = vmatprep.subr.bf16.mxu0 %v809_v33  ;;  %v831_v1 = vpack.c.bf16 %v322_v0, %v320_v63  ;;  %v327_v3 = vld [vmem:[%s1729_s3 + $0x218] sm:$0xff]  ;;  %v560_v5 = vld [vmem:[%s1731_s5 + $0x80] sm:$0xff]  ;;  %v561_v6 = vld [vmem:[%s1731_s5 + $0x88] sm:$0xff] }
  0x3f   :  { %766 = vmatprep.subr.bf16.mxu1 %v765_v29  ;;  %v833_v4 = vpack.c.bf16 %v327_v3, %v325_v2  ;;  %v544_v8 = vld [vmem:[%s1731_s5] sm:$0xff]  ;;  %v897_v9 = vpack.c.bf16 %v561_v6, %v560_v5  ;;  %v545_v10 = vld [vmem:[%s1731_s5 + $0x8] sm:$0xff]  ;;  %v562_v11 = vld [vmem:[%s1731_s5 + $0x90] sm:$0xff] }
  0x40   :  { %v563_v12 = vld [vmem:[%s1731_s5 + $0x98] sm:$0xff]  ;;  %v899_v13 = vpack.c.bf16 %v545_v10, %v544_v8  ;;  %v546_v15 = vld [vmem:[%s1731_s5 + $0x10] sm:$0xff]  ;;  %v564_v18 = vld [vmem:[%s1731_s5 + $0xa0] sm:$0xff] }
  0x41   :  { %812 = vmatpush1.bf16.msra.mxu0 %v811_v38  ;;  %v901_v14 = vpack.c.bf16 %v563_v12, %v562_v11  ;;  %v547_v17 = vld [vmem:[%s1731_s5 + $0x18] sm:$0xff]  ;;  %v565_v19 = vld [vmem:[%s1731_s5 + $0xa8] sm:$0xff]  ;;  %v548_v22 = vld [vmem:[%s1731_s5 + $0x20] sm:$0xff] }
  0x42   :  { %768 = vmatpush1.bf16.msra.mxu1 %v767_v35  ;;  %814 = vmatprep.subr.bf16.mxu0 %v813_v39  ;;  %v903_v20 = vpack.c.bf16 %v547_v17, %v546_v15  ;;  %v905_v21 = vpack.c.bf16 %v565_v19, %v564_v18  ;;  %v549_v23 = vld [vmem:[%s1731_s5 + $0x28] sm:$0xff]  ;;  %v566_v24 = vld [vmem:[%s1731_s5 + $0xb0] sm:$0xff]  ;;  %v567_v25 = vld [vmem:[%s1731_s5 + $0xb8] sm:$0xff] }
  0x43   :  { %898 = vmatprep.subr.bf16.mxu1 %v897_v9  ;;  %v907_v26 = vpack.c.bf16 %v549_v23, %v548_v22  ;;  %v909_v27 = vpack.c.bf16 %v567_v25, %v566_v24  ;;  %v550_v28 = vld [vmem:[%s1731_s5 + $0x30] sm:$0xff]  ;;  %v551_v29 = vld [vmem:[%s1731_s5 + $0x38] sm:$0xff]  ;;  %v568_v30 = vld [vmem:[%s1731_s5 + $0xc0] sm:$0xff] }
  0x44   :  { %v569_v31 = vld [vmem:[%s1731_s5 + $0xc8] sm:$0xff]  ;;  %v911_v32 = vpack.c.bf16 %v551_v29, %v550_v28  ;;  %v552_v34 = vld [vmem:[%s1731_s5 + $0x40] sm:$0xff]  ;;  %v570_v35 = vld [vmem:[%s1731_s5 + $0xd0] sm:$0xff] }
  0x45   :  { %250 = vmatmul.mubr.f32.vlgmr.msra.gmra.mrb[2].mxu1 %v1167_v16  ;;  %816 = vmatpush1.bf16.msra.mxu0 %v815_v44  ;;  %v819_v16 = vpack.c.bf16 %v310_v47, %v308_v46  ;;  %v913_v33 = vpack.c.bf16 %v569_v31, %v568_v30  ;;  %v553_v7 = vld [vmem:[%s1731_s5 + $0x48] sm:$0xff]  ;;  %v571_v36 = vld [vmem:[%s1731_s5 + $0xd8] sm:$0xff]  ;;  %v554_v39 = vld [vmem:[%s1731_s5 + $0x50] sm:$0xff] }
  0x46   :  { %818 = vmatprep.subr.bf16.mxu0 %v817_v45  ;;  %900 = vmatpush3.bf16.msra.mxu1 %v899_v13  ;;  %v915_v37 = vpack.c.bf16 %v553_v7, %v552_v34  ;;  %v917_v38 = vpack.c.bf16 %v571_v36, %v570_v35  ;;  %v555_v40 = vld [vmem:[%s1731_s5 + $0x58] sm:$0xff]  ;;  %v572_v41 = vld [vmem:[%s1731_s5 + $0xe0] sm:$0xff]  ;;  %v573_v42 = vld [vmem:[%s1731_s5 + $0xe8] sm:$0xff]  ;;  %v94_v45 = vlaneseq }
  0x47   :  { %902 = vmatprep.subr.bf16.mxu1 %v901_v14  ;;  %v919_v43 = vpack.c.bf16 %v555_v40, %v554_v39  ;;  %v921_v44 = vpack.c.bf16 %v573_v42, %v572_v41  ;;  %v1484_v48 = vld [vmem:[%s1728_s2] sm:$0xf]  ;;  %v329_v57 = vld [vmem:[%s1729_s3 + $0x228] sm:$0xff]  ;;  %v331_v58 = vld [vmem:[%s1729_s3 + $0x238] sm:$0xff] }
  0x48   :  { %v1478_v46 = vshrl.u32 %v94_v45, 7  ;;  %v324_v54 = vld [vmem:[%s1729_s3 + $0x200] sm:$0xff]  ;;  %v330_v0 = vld [vmem:[%s1729_s3 + $0x230] sm:$0xff]  ;;  %v335_v2 = vld [vmem:[%s1729_s3 + $0x258] sm:$0xff] }
  0x49   :  { %820 = vmatpush1.bf16.msra.mxu0 %v819_v16  ;;  %v328_v63 = vld [vmem:[%s1729_s3 + $0x220] sm:$0xff]  ;;  %v334_v6 = vld [vmem:[%s1729_s3 + $0x250] sm:$0xff]  ;;  %v337_v8 = vld [vmem:[%s1729_s3 + $0x268] sm:$0xff] }
  0x4a   :  { %822 = vmatprep.subr.bf16.mxu0 %v821_v50  ;;  %904 = vmatpush3.bf16.msra.mxu1 %v903_v20  ;;  %v96_v47 = vsub.s32 0, %v1478_v46  ;;  %v100_v49 = vsub.s32 1, %v1478_v46  ;;  %v839_v3 = vpack.c.bf16 %v330_v0, %v328_v63  ;;  %v332_v5 = vld [vmem:[%s1729_s3 + $0x240] sm:$0xff]  ;;  %v339_v9 = vld [vmem:[%s1729_s3 + $0x278] sm:$0xff]  ;;  %v338_v13 = vld [vmem:[%s1729_s3 + $0x270] sm:$0xff]  ;;  %v108_v7 = vsub.s32 3, %v1478_v46 }
  0x4b   :  { %906 = vmatprep.subr.bf16.mxu1 %v905_v21  ;;  %v843_v10 = vpack.c.bf16 %v334_v6, %v332_v5  ;;  %v845_v11 = vpack.c.bf16 %v339_v9, %v337_v8  ;;  %v336_v12 = vld [vmem:[%s1729_s3 + $0x260] sm:$0xff]  ;;  %v341_v14 = vld [vmem:[%s1729_s3 + $0x288] sm:$0xff]  ;;  %v343_v15 = vld [vmem:[%s1729_s3 + $0x298] sm:$0xff] }
  0x4c   :  { %v97_v16 = vrot.slane %v1484_v48, %v96_v47  ;;  %v101_v50 = vrot.slane %v1484_v48, %v100_v49  ;;  %v847_v17 = vpack.c.bf16 %v338_v13, %v336_v12  ;;  %v849_v18 = vpack.c.bf16 %v343_v15, %v341_v14  ;;  %v340_v19 = vld [vmem:[%s1729_s3 + $0x280] sm:$0xff]  ;;  %v342_v20 = vld [vmem:[%s1729_s3 + $0x290] sm:$0xff]  ;;  %v345_v21 = vld [vmem:[%s1729_s3 + $0x2a8] sm:$0xff] }
  0x4d   :  { %824 = vmatpush1.bf16.msra.mxu0 %v823_v55  ;;  %v326_v55 = vld [vmem:[%s1729_s3 + $0x210] sm:$0xff]  ;;  %v347_v22 = vld [vmem:[%s1729_s3 + $0x2b8] sm:$0xff]  ;;  %v851_v23 = vpack.c.bf16 %v342_v20, %v340_v19  ;;  %v344_v25 = vld [vmem:[%s1729_s3 + $0x2a0] sm:$0xff]  ;;  %v109_v41 = vrot.slane %v1484_v48, %v108_v7 }
  0x4e   :  { %826 = vmatprep.subr.bf16.mxu0 %v825_v56  ;;  %908 = vmatpush3.bf16.msra.mxu1 %v907_v26  ;;  %v835_v60 = vpack.c.bf16 %v326_v55, %v324_v54  ;;  %v853_v24 = vpack.c.bf16 %v347_v22, %v345_v21  ;;  %v346_v26 = vld [vmem:[%s1729_s3 + $0x2b0] sm:$0xff]  ;;  %v351_v28 = vld [vmem:[%s1729_s3 + $0x2d8] sm:$0xff]  ;;  %v348_v31 = vld [vmem:[%s1729_s3 + $0x2c0] sm:$0xff] }
  0x4f   :  { %910 = vmatprep.subr.bf16.mxu1 %v909_v27  ;;  %v349_v27 = vld [vmem:[%s1729_s3 + $0x2c8] sm:$0xff]  ;;  %v855_v29 = vpack.c.bf16 %v346_v26, %v344_v25  ;;  %v355_v34 = vld [vmem:[%s1729_s3 + $0x2f8] sm:$0xff]  ;;  %v356_v45 = vld [vmem:[%s1729_s3 + $0x300] sm:$0xff] }
  0x50   :  { %v857_v30 = vpack.c.bf16 %v351_v28, %v349_v27  ;;  %v357_v39 = vld [vmem:[%s1729_s3 + $0x308] sm:$0xff]  ;;  %v359_v40 = vld [vmem:[%s1729_s3 + $0x318] sm:$0xff]  ;;  %v364_v63 = vld [vmem:[%s1729_s3 + $0x340] sm:$0xff] }
  0x51   :  { %828 = vmatpush1.bf16.msra.mxu0 %v827_v59  ;;  %v366_v0 = vld [vmem:[%s1729_s3 + $0x350] sm:$0xff]  ;;  %v368_v5 = vld [vmem:[%s1729_s3 + $0x360] sm:$0xff]  ;;  %v373_v8 = vld [vmem:[%s1729_s3 + $0x388] sm:$0xff] }
  0x52   :  { %830 = vmatprep.subr.bf16.mxu0 %v829_v62  ;;  %912 = vmatpush3.bf16.msra.mxu1 %v911_v32  ;;  %v837_v62 = vpack.c.bf16 %v331_v58, %v329_v57  ;;  %v350_v32 = vld [vmem:[%s1729_s3 + $0x2d0] sm:$0xff]  ;;  %v360_v57 = vld [vmem:[%s1729_s3 + $0x320] sm:$0xff]  ;;  %v375_v9 = vld [vmem:[%s1729_s3 + $0x398] sm:$0xff] }
  0x53   :  { %914 = vmatprep.subr.bf16.mxu1 %v913_v33  ;;  %v353_v33 = vld [vmem:[%s1729_s3 + $0x2e8] sm:$0xff]  ;;  %v859_v35 = vpack.c.bf16 %v350_v32, %v348_v31  ;;  %v362_v58 = vld [vmem:[%s1729_s3 + $0x330] sm:$0xff]  ;;  %v372_v12 = vld [vmem:[%s1729_s3 + $0x380] sm:$0xff] }
  0x54   :  { %v861_v36 = vpack.c.bf16 %v355_v34, %v353_v33  ;;  %v370_v6 = vld [vmem:[%s1729_s3 + $0x370] sm:$0xff]  ;;  %v377_v14 = vld [vmem:[%s1729_s3 + $0x3a8] sm:$0xff]  ;;  %v379_v15 = vld [vmem:[%s1729_s3 + $0x3b8] sm:$0xff] }
  0x55   :  { %832 = vmatpush1.bf16.msra.mxu0 %v831_v1  ;;  %v333_v1 = vld [vmem:[%s1729_s3 + $0x248] sm:$0xff]  ;;  %v374_v13 = vld [vmem:[%s1729_s3 + $0x390] sm:$0xff]  ;;  %v376_v19 = vld [vmem:[%s1729_s3 + $0x3a0] sm:$0xff] }
  0x56   :  { %834 = vmatprep.subr.bf16.mxu0 %v833_v4  ;;  %916 = vmatpush3.bf16.msra.mxu1 %v915_v37  ;;  %v841_v4 = vpack.c.bf16 %v335_v2, %v333_v1  ;;  %v352_v37 = vld [vmem:[%s1729_s3 + $0x2e0] sm:$0xff]  ;;  %v369_v1 = vld [vmem:[%s1729_s3 + $0x368] sm:$0xff]  ;;  %v371_v2 = vld [vmem:[%s1729_s3 + $0x378] sm:$0xff] }
  0x57   :  { %918 = vmatprep.subr.bf16.mxu1 %v917_v38  ;;  %v354_v38 = vld [vmem:[%s1729_s3 + $0x2f0] sm:$0xff]  ;;  %v381_v21 = vld [vmem:[%s1729_s3 + $0x3c8] sm:$0xff]  ;;  %v383_v22 = vld [vmem:[%s1729_s3 + $0x3d8] sm:$0xff] }
  0x58   :  { %v863_v42 = vpack.c.bf16 %v354_v38, %v352_v37  ;;  %v378_v20 = vld [vmem:[%s1729_s3 + $0x3b0] sm:$0xff]  ;;  %v889_v25 = vpack.c.bf16 %v383_v22, %v381_v21  ;;  %v380_v26 = vld [vmem:[%s1729_s3 + $0x3c0] sm:$0xff]  ;;  %v385_v28 = vld [vmem:[%s1729_s3 + $0x3e8] sm:$0xff] }
  0x59   :  { %v382_v27 = vld [vmem:[%s1729_s3 + $0x3d0] sm:$0xff]  ;;  %v384_v33 = vld [vmem:[%s1729_s3 + $0x3e0] sm:$0xff]  ;;  %v557_v37 = vld [vmem:[%s1731_s5 + $0x68] sm:$0xff] }
  0x5a   :  { %920 = vmatpush3.bf16.msra.mxu1 %v919_v43  ;;  %v386_v34 = vld [vmem:[%s1729_s3 + $0x3f0] sm:$0xff] }
  0x5b   :  { %922 = vmatprep.subr.bf16.mxu1 %v921_v44  ;;  %v865_v44 = vpack.c.bf16 %v359_v40, %v357_v39  ;;  %v895_v7 = vpack.c.bf16 %v386_v34, %v384_v33  ;;  %v574_v39 = vld [vmem:[%s1731_s5 + $0xf0] sm:$0xff]  ;;  %v575_v40 = vld [vmem:[%s1731_s5 + $0xf8] sm:$0xff] }
  0xf8   :  { %v180_v51 = vpop.f32.mrb[0].mxu1 }
  0xf9   :  { %v181_v52 = vadd.f32 %v180_v51, %v97_v16  ;;  %v182_v53 = vpop.f32.mrb[1].mxu1  ;;  %v358_v16 = vld [vmem:[%s1729_s3 + $0x310] sm:$0xff]  ;;  %v361_v51 = vld [vmem:[%s1729_s3 + $0x328] sm:$0xff] }
  0xfa   :  { %v183_v56 = vadd.f32 %v182_v53, %v101_v50  ;;  %v867_v54 = vpack.c.bf16 %v358_v16, %v356_v45  ;;  %v388_v45 = vld [vmem:[%s1730_s4] sm:$0x3]  ;;  %s960_s4 = smov [#allocation2]  }
  0xfb   :  { %v256_v61 = vmax.f32 %v181_v52, 0.0  ;;  %v363_v52 = vld [vmem:[%s1729_s3 + $0x338] sm:$0xff]  ;;  %v393_v16 = vrot.slane %v388_v45, %v96_v47  ;;  %s661_s11 = sshll.u32 %s960_s4, 4  ;;  %s662_s11 = int_to_ptr.vmem [resolvable:$true] %s661_s11 }
  0xfc   :  { %v257_v59 = vmax.f32 %v183_v56, 0.0  ;;  %v869_v56 = vpack.c.bf16 %v363_v52, %v361_v51  ;;  %s935_s12 = scalar_lea.vmem %s662_s11, 32  ;;  %p940_p1 = scmp.lt.s32.totalorder %s662_s11, %s662_s11 }
  0xfd   :  { %p936_p0 = scmp.ne.s32.totalorder %s662_s11, %s935_s12  ;;  %p941_p2 = scmp.lt.s32.totalorder %s935_s12, %s935_s12 }
  0xfe   :  { %464 = vmatprep.mubr.f32.mxu0 %v257_v59  ;;  %v365_v59 = vld [vmem:[%s1729_s3 + $0x348] sm:$0xff] }
  0xff   :  { %465 = vmatmul.mubr.f32.vlgmr.msra.gmra.mrb[0].mxu0 %v256_v61  ;;  %v871_v61 = vpack.c.bf16 %v362_v58, %v360_v57  ;;  %v669_v58 = vld [vmem:[%s1732_s6] ss:$0 sm:$0xff]  ;;  %p942_p3 = por %p941_p2, %p940_p1 }
 0x100   :  { %836 = vmatpush1.bf16.msra.mxu0 %v835_v60  ;;  %v367_v60 = vld [vmem:[%s1729_s3 + $0x358] sm:$0xff] }
 0x101   :  { %838 = vmatprep.subr.bf16.mxu0 %v837_v62  ;;  %v873_v62 = vpack.c.bf16 %v367_v60, %v365_v59  ;;  %p943_p4 = pnand %p942_p3, %p936_p0 }
 0x104   :  { %840 = vmatpush1.bf16.msra.mxu0 %v839_v3  ;;  %v875_v3 = vpack.c.bf16 %v366_v0, %v364_v63 }
 0x105   :  { %842 = vmatprep.subr.bf16.mxu0 %v841_v4  ;;  %v877_v4 = vpack.c.bf16 %v371_v2, %v369_v1 }
 0x108   :  { %844 = vmatpush1.bf16.msra.mxu0 %v843_v10  ;;  %v879_v10 = vpack.c.bf16 %v370_v6, %v368_v5 }
 0x109   :  { %846 = vmatprep.subr.bf16.mxu0 %v845_v11  ;;  %v881_v11 = vpack.c.bf16 %v375_v9, %v373_v8 }
 0x10c   :  { %848 = vmatpush1.bf16.msra.mxu0 %v847_v17  ;;  %v883_v17 = vpack.c.bf16 %v374_v13, %v372_v12 }
 0x10d   :  { %850 = vmatprep.subr.bf16.mxu0 %v849_v18  ;;  %v885_v18 = vpack.c.bf16 %v379_v15, %v377_v14 }
 0x110   :  { %852 = vmatpush1.bf16.msra.mxu0 %v851_v23  ;;  %v887_v23 = vpack.c.bf16 %v378_v20, %v376_v19 }
 0x111   :  { %854 = vmatprep.subr.bf16.mxu0 %v853_v24  ;;  %v104_v24 = vsub.s32 2, %v1478_v46 }
 0x113   :  { %v105_v31 = vrot.slane %v1484_v48, %v104_v24  ;;  %v556_v48 = vld [vmem:[%s1731_s5 + $0x60] sm:$0xff] }
 0x114   :  { %856 = vmatpush1.bf16.msra.mxu0 %v855_v29  ;;  %v387_v29 = vld [vmem:[%s1729_s3 + $0x3f8] sm:$0xff]  ;;  %v923_v38 = vpack.c.bf16 %v557_v37, %v556_v48 }
 0x115   :  { %858 = vmatprep.subr.bf16.mxu0 %v857_v30  ;;  %v891_v30 = vpack.c.bf16 %v382_v27, %v380_v26  ;;  %v893_v32 = vpack.c.bf16 %v387_v29, %v385_v28 }
 0x116   :  { %924 = vmatpush3.bf16.msra.mxu1 %v923_v38 }
 0x118   :  { %860 = vmatpush1.bf16.msra.mxu0 %v859_v35  ;;  %v1591_v43 = vpop.f32.mrb[2].mxu1 }
 0x119   :  { %862 = vmatprep.subr.bf16.mxu0 %v861_v36  ;;  %v253_v50 = vpop.f32.mrb[3].mxu1  ;;  %v252_v35 = vadd.f32 %v1591_v43, %v105_v31  ;;  %v559_v43 = vld [vmem:[%s1731_s5 + $0x78] sm:$0xff] }
 0x11a   :  { %v254_v53 = vadd.f32 %v253_v50, %v109_v41  ;;  %v925_v41 = vpack.c.bf16 %v575_v40, %v574_v39  ;;  %v397_v50 = vrot.slane %v388_v45, %v100_v49 }
 0x11b   :  { %v258_v36 = vmax.f32 %v252_v35, 0.0 }
 0x11c   :  { %864 = vmatpush1.bf16.msra.mxu0 %v863_v42  ;;  %v259_v55 = vmax.f32 %v254_v53, 0.0  ;;  %v558_v42 = vld [vmem:[%s1731_s5 + $0x70] sm:$0xff]  ;;  %926 = vmatprep.subr.bf16.mxu1 %v925_v41 }
 0x11d   :  { %866 = vmatprep.subr.bf16.mxu0 %v865_v44  ;;  %v927_v44 = vpack.c.bf16 %v559_v43, %v558_v42 }
 0x11e   :  { %535 = vmatprep.mubr.f32.mxu0 %v259_v55 }
 0x11f   :  { %928 = vmatpush3.bf16.msra.mxu1 %v927_v44 }
 0x120   :  { %868 = vmatpush1.bf16.msra.mxu0 %v867_v54 }
 0x121   :  { %870 = vmatprep.subr.bf16.mxu0 %v869_v56 }
 0x124   :  { %872 = vmatpush1.bf16.msra.mxu0 %v871_v61 }
 0x125   :  { %874 = vmatprep.subr.bf16.mxu0 %v873_v62 }
 0x128   :  { %876 = vmatpush1.bf16.msra.mxu0 %v875_v3 }
 0x129   :  { %878 = vmatprep.subr.bf16.mxu0 %v877_v4 }
 0x12c   :  { %880 = vmatpush1.bf16.msra.mxu0 %v879_v10 }
 0x12d   :  { %882 = vmatprep.subr.bf16.mxu0 %v881_v11 }
 0x130   :  { %884 = vmatpush1.bf16.msra.mxu0 %v883_v17 }
 0x131   :  { %886 = vmatprep.subr.bf16.mxu0 %v885_v18 }
 0x134   :  { %888 = vmatpush1.bf16.msra.mxu0 %v887_v23 }
 0x135   :  { %890 = vmatprep.subr.bf16.mxu0 %v889_v25 }
 0x138   :  { %892 = vmatpush1.bf16.msra.mxu0 %v891_v30 }
 0x139   :  { %894 = vmatprep.subr.bf16.mxu0 %v893_v32 }
 0x13c   :  { %896 = vmatpush1.bf16.msra.mxu0 %v895_v7 }
 0x13f   :  { %536 = vmatmul.mubr.f32.vlgmr.msra.gmra.mrb[0].mxu0 %v258_v36 }
 0x212   :  { %v537_v51 = vpop.f32.mrb[0].mxu0 }
 0x213   :  { %v929_v52 = vadd.f32 %v537_v51, %v393_v16  ;;  %v539_v53 = vpop.f32.mrb[1].mxu0 }
 0x214   :  { %v930_v54 = vadd.f32 %v539_v53, %v397_v50 }
 0x215   :  { %v542_v56 = vmax.f32 %v929_v52, 0.0 }
 0x216   :  { %v543_v55 = vmax.f32 %v930_v54, 0.0 }
 0x218   :  { %647 = vmatprep.mubr.f32.mxu1 %v543_v55 }
 0x219   :  { %648 = vmatmul.mubr.f32.vlgmr.msra.gmra.mrb[4].mxu1 %v542_v56 }
 0x2ec   :  { %v702_v57 = vpop.f32.mrb[4].mxu1 }
 0x2ed   :  { %v703_v59 = vpop.f32.mrb[5].mxu1 }
 0x2ee   :  { %v704_v47 = vadd.f32 %v703_v59, %v702_v57 }
 0x2f0   :  { %v650_v46 = vadd.f32 %v704_v47, %v669_v58 }
 0x2f2   :  { %654 = vst.msk [vmem:[#allocation2] sm:$0x3] %vm653_vm0, %v650_v46 }
 0x2f3   :  { %946 = shalt.err (!%p943_p4)
}
 0x2f4   :  { %s947_s15 = scalar_lea.hbm %s1733_s7, 32 }
 0x2f5   :  { %p948_p5 = scmp.ne.s32.totalorder %s1733_s7, %s947_s15  ;;  %p951_p6 = scmp.lt.u32.totalorder %s947_s15, %s1733_s7 }
 0x2f7   :  { %p953_p7 = pnand %p951_p6, %p948_p5 }
 0x2f9   :  { %956 = shalt.err (!%p953_p7)
}
 0x2fa   :  { %664 = dma.vmem_to_hbm [thread:$0]  %s662_s11, 32, %s1733_s7, [#allocation3]  }
 0x2fb   :  { %957 = dma.done.wait [#allocation3], 32  }
 0x2fc   :  { %958 = vsyncadd [#allocation3], 4294967264 }
 0x2fd   :  { %668 = vsyncpa [#allocation3], 1 }

</bundles_post_ra>
